<compile_context>
chip_gen: v7x
topology: tpu7x:2x2x1
jax: 0.10.0
libtpu: 0.0.40
codegen_flags: <defaults>
</compile_context>

<pallas_src>
import functools

import numpy as np
import jax
import jax.numpy as jnp
from jax.experimental import pallas as pl
from jax.experimental.pallas import tpu as pltpu


def _round_up(x, m):
    return (x + m - 1) // m * m


def _largest_divisor_leq(n, cap):
    cap = max(1, min(cap, n))
    for d in range(cap, 0, -1):
        if n % d == 0:
            return d
    return 1


def _mlp_head_kernel(x_ref, w_ref, b_ref, out_ref, pooled_acc, *,
                     hw_total, hw_tile, need_hw_mask):
    # x_ref:      (B_tile, C, hw_tile)  activation dtype (NCHW layout, lane = spatial)
    # w_ref:      (C, N_pad)            f32 fused (1/HW) * W1^T @ W2^T
    # b_ref:      (1, N_pad)            f32 fused b1 @ W2^T + b2
    # out_ref:    (1, B_tile, N_pad)    activation dtype
    # pooled_acc: (B_tile, C)           f32 scratch, persists across spatial steps
    hw_i = pl.program_id(1)

    @pl.when(hw_i == 0)
    def _():
        pooled_acc[...] = jnp.zeros_like(pooled_acc)

    x = x_ref[...]                                          # (B_tile, C, hw_tile)
    if need_hw_mask:
        # Ragged last spatial tile: zero out-of-range lanes before reducing.
        col = jax.lax.broadcasted_iota(jnp.int32, x.shape, 2)
        valid = (hw_i * hw_tile + col) < hw_total
        x = jnp.where(valid, x, jnp.zeros_like(x))

    # Per-vreg widening sum: native-dtype loads, f32 accumulation, no full-tile
    # f32 temporary.
    pooled_acc[...] += jnp.sum(x, axis=2, dtype=jnp.float32)

    @pl.when(hw_i == pl.num_programs(1) - 1)
    def _():
        y = jnp.dot(pooled_acc[...], w_ref[...],
                    preferred_element_type=jnp.float32) + b_ref[...]
        out_ref[...] = y[None].astype(out_ref.dtype)


def fuse_mlp_params(w1, b1, w2, b2, spatial_size):
    """Fuse f1/f2 and fold in the 1/(H*W) pool scale.  Call ONCE at parameter
    load time - a (C,C)@(C,N) matmul per forward call would rival the kernel
    itself for small batches."""
    f32 = jnp.float32
    N = w2.shape[0]
    N_pad = _round_up(N, 128)
    w_fused = (w1.T.astype(f32) @ w2.T.astype(f32)) * (1.0 / spatial_size)   # (C, N)
    b_fused = b1.astype(f32) @ w2.T.astype(f32) + b2.astype(f32)             # (N,)
    w_p = jnp.pad(w_fused, ((0, 0), (0, N_pad - N)))
    b_p = jnp.pad(b_fused, ((0, N_pad - N),)).reshape(1, N_pad)
    return w_p, b_p


def mlp_head_forward(x, w_fused, b_fused, num_class):
    """x: (B, C, H, W) NCHW activations (f32 or bf16).
    w_fused: (C, N_pad) f32, b_fused: (1, N_pad) f32 from fuse_mlp_params."""
    B, C, H, W = x.shape
    HW = H * W
    N_pad = w_fused.shape[1]
    itemsize = np.dtype(x.dtype).itemsize

    # Free reshape of contiguous NCHW; the kernel reduces over the spatial
    # (lane) axis directly - no transpose / pad / cast HBM passes.
    x_r = x.reshape(B, C, HW)

    # ---- generation-aware tile / VMEM budget ----
    try:
        vmem_cap = int(pltpu.get_tpu_info().vmem_capacity_bytes)
    except Exception:
        vmem_cap = 64 << 20                      # conservative (v7x per-core VMEM)
    tile_budget = min(vmem_cap // 8, 16 << 20)   # per x buffer (double-buffered)

    # Spatial tiling: full HW if one row fits, else multiples of 128 lanes with
    # a masked ragged tail handled in-kernel.
    row_bytes = C * HW * itemsize
    if row_bytes <= tile_budget or HW <= 128:
        hw_tile = HW
    else:
        hw_tile = max(128, (tile_budget // (C * itemsize)) // 128 * 128)
        if hw_tile >= HW:
            hw_tile = HW
    num_hw = pl.cdiv(HW, hw_tile)
    need_hw_mask = (HW % hw_tile) != 0

    # Batch tiling: largest divisor of B within the budget; keep >=2 parallel
    # tiles when B >= 2 so v7x's two TensorCores both get work.
    block_row_bytes = C * hw_tile * itemsize
    b_cap = max(1, tile_budget // block_row_bytes)
    if B >= 2:
        b_cap = min(b_cap, (B + 1) // 2)
    B_tile = _largest_divisor_leq(B, b_cap)
    num_b = B // B_tile

    # ---- explicit VMEM limit (v5e scoped default is only 16 MiB) ----
    x_block = B_tile * C * hw_tile * itemsize
    out_block = B_tile * N_pad * itemsize
    w_bytes = C * N_pad * 4
    b_bytes = N_pad * 4
    pooled_bytes = B_tile * C * 4
    vmem_needed = 2 * (x_block + out_block) + w_bytes + b_bytes + pooled_bytes + (2 << 20)
    vmem_limit = int(min(max(vmem_needed, 16 << 20), int(vmem_cap * 0.9)))

    cost = pl.CostEstimate(
        flops=2 * B * C * N_pad + B * HW * C,
        transcendentals=0,
        bytes_accessed=B * C * HW * itemsize + w_bytes + b_bytes + B * N_pad * itemsize,
    )

    kernel = functools.partial(_mlp_head_kernel, hw_total=HW, hw_tile=hw_tile,
                               need_hw_mask=need_hw_mask)

    out = pl.pallas_call(
        kernel,
        out_shape=jax.ShapeDtypeStruct((num_b, B_tile, N_pad), x.dtype),
        grid=(num_b, num_hw),
        in_specs=[
            # batch- and spatial-tiled activations
            pl.BlockSpec((B_tile, C, hw_tile), lambda b, h: (b, 0, h)),
            # constant-index, VMEM-resident, single-buffered weight / bias
            pl.BlockSpec((C, N_pad), lambda b, h: (0, 0),
                         pipeline_mode=pl.Buffered(1)),
            pl.BlockSpec((1, N_pad), lambda b, h: (0, 0),
                         pipeline_mode=pl.Buffered(1)),
        ],
        out_specs=pl.BlockSpec((1, B_tile, N_pad), lambda b, h: (b, 0, 0)),
        scratch_shapes=[pltpu.VMEM((B_tile, C), jnp.float32)],
        compiler_params=pltpu.CompilerParams(
            dimension_semantics=("parallel", "arbitrary"),
            vmem_limit_bytes=vmem_limit,
        ),
        cost_estimate=cost,
    )(x_r, w_fused, b_fused)

    return out.reshape(B, N_pad)[:, :num_class]


def mlp_reference(x, w1, b1, w2, b2):
    pooled = jnp.mean(x, axis=(2, 3))                 # AdaptiveAvgPool2d(1) + squeeze
    h = pooled @ w1.T + b1
    return h @ w2.T + b2


if __name__ == "__main__":
    # Small shapes consistent with the module (input_channels -> C, num_class).
    B, C, H, W = 4, 256, 8, 8
    num_class = 128

    key = jax.random.PRNGKey(0)
    kx, k1, k2, k3, k4 = jax.random.split(key, 5)

    x = jax.random.normal(kx, (B, C, H, W), dtype=jnp.float32)

    # Deterministic parameter init (PyTorch Linear-style uniform bounds).
    bound = 1.0 / (C ** 0.5)
    w1 = jax.random.uniform(k1, (C, C), minval=-bound, maxval=bound, dtype=jnp.float32)
    b1 = jax.random.uniform(k2, (C,), minval=-bound, maxval=bound, dtype=jnp.float32)
    w2 = jax.random.uniform(k3, (num_class, C), minval=-bound, maxval=bound, dtype=jnp.float32)
    b2 = jax.random.uniform(k4, (num_class,), minval=-bound, maxval=bound, dtype=jnp.float32)

    ref = mlp_reference(x, w1, b1, w2, b2)

    # Fuse the two bias-only Linears ONCE (parameter-load time), not per call.
    w_fused, b_fused = jax.block_until_ready(fuse_mlp_params(w1, b1, w2, b2, H * W))

    # Primary path: native f32 activations (no wrapper transpose/pad/cast).
    out = jax.block_until_ready(mlp_head_forward(x, w_fused, b_fused, num_class))
    assert out.shape == (B, num_class), out.shape
    assert jnp.allclose(out, ref, atol=2e-3, rtol=2e-3), "f32 kernel mismatch vs reference"

    # Secondary check: bf16 activations straight into the kernel (f32 accumulation).
    out_bf16 = jax.block_until_ready(
        mlp_head_forward(x.astype(jnp.bfloat16), w_fused, b_fused, num_class))
    assert jnp.allclose(out_bf16.astype(jnp.float32), ref, atol=2e-2, rtol=2e-2), \
        "bf16 kernel mismatch vs reference"

    print("KERNEL_OK")
</pallas_src>

<mosaic_0001>
module attributes {stable_mosaic.version = 11 : i64} {
  func.func @_mlp_head_kernel(%arg0: i32, %arg1: i32, %arg2: memref<2x256x64xf32, #tpu.memory_space<vmem>>, %arg3: memref<256x128xf32, #tpu.memory_space<vmem>>, %arg4: memref<1x128xf32, #tpu.memory_space<vmem>>, %arg5: memref<1x2x128xf32, #tpu.memory_space<vmem>>, %arg6: memref<2x256xf32, #tpu.memory_space<vmem>>) attributes {dimension_semantics = [#tpu.dimension_semantics<parallel>, #tpu.dimension_semantics<arbitrary>], iteration_bounds = array<i64: 2, 1>, scalar_prefetch = 0 : i64, scratch_operands = 1 : i64, tpu.core_type = #tpu.core_type<tc>, window_params = [{transform_indices = @transform_0, window_bounds = array<i64: 2, 256, 64>}, {pipeline_mode = #tpu.pipeline_mode<synchronous>, transform_indices = @transform_1, window_bounds = array<i64: 256, 128>}, {pipeline_mode = #tpu.pipeline_mode<synchronous>, transform_indices = @transform_2, window_bounds = array<i64: 1, 128>}, {transform_indices = @transform_3, window_bounds = array<i64: 1, 2, 128>}]} {
    %c0_i32 = arith.constant 0 : i32
    %0 = arith.cmpi eq, %arg1, %c0_i32 : i32
    %1 = arith.extui %0 : i1 to i32
    %c0_i32_0 = arith.constant 0 : i32
    %2 = arith.cmpi ne, %1, %c0_i32_0 : i32
    scf.if %2 {
      %cst_9 = arith.constant 0.000000e+00 : f32
      %11 = vector.broadcast %cst_9 : f32 to vector<2x256xf32>
      %c0_10 = arith.constant 0 : index
      %c0_11 = arith.constant 0 : index
      %12 = vector.load %arg6[%c0_10, %c0_11] : memref<2x256xf32, #tpu.memory_space<vmem>>, vector<2x256xf32>
      tpu.vector_store %arg6[%c0_10, %c0_11], %11 {strides = array<i32>} : memref<2x256xf32, #tpu.memory_space<vmem>>, vector<2x256xf32>,
    } else {
    }
    %c0 = arith.constant 0 : index
    %c0_1 = arith.constant 0 : index
    %c0_2 = arith.constant 0 : index
    %3 = vector.load %arg2[%c0, %c0_1, %c0_2] : memref<2x256x64xf32, #tpu.memory_space<vmem>>, vector<2x256x64xf32>
    %c0_3 = arith.constant 0 : index
    %c0_4 = arith.constant 0 : index
    %4 = vector.load %arg6[%c0_3, %c0_4] : memref<2x256xf32, #tpu.memory_space<vmem>>, vector<2x256xf32>
    %cst = arith.constant dense<0.000000e+00> : vector<2x256xf32>
    %5 = vector.multi_reduction <add>, %3, %cst [2] : vector<2x256x64xf32> to vector<2x256xf32>
    %6 = arith.addf %4, %5 : vector<2x256xf32>
    %c0_5 = arith.constant 0 : index
    %c0_6 = arith.constant 0 : index
    %7 = vector.load %arg6[%c0_5, %c0_6] : memref<2x256xf32, #tpu.memory_space<vmem>>, vector<2x256xf32>
    tpu.vector_store %arg6[%c0_5, %c0_6], %6 {strides = array<i32>} : memref<2x256xf32, #tpu.memory_space<vmem>>, vector<2x256xf32>,
    %c0_i32_7 = arith.constant 0 : i32
    %8 = arith.cmpi eq, %arg1, %c0_i32_7 : i32
    %9 = arith.extui %8 : i1 to i32
    %c0_i32_8 = arith.constant 0 : i32
    %10 = arith.cmpi ne, %9, %c0_i32_8 : i32
    scf.if %10 {
      %c0_9 = arith.constant 0 : index
      %c0_10 = arith.constant 0 : index
      %11 = vector.load %arg6[%c0_9, %c0_10] : memref<2x256xf32, #tpu.memory_space<vmem>>, vector<2x256xf32>
      %c0_11 = arith.constant 0 : index
      %c0_12 = arith.constant 0 : index
      %12 = vector.load %arg3[%c0_11, %c0_12] : memref<256x128xf32, #tpu.memory_space<vmem>>, vector<256x128xf32>
      %cst_13 = arith.constant dense<0.000000e+00> : vector<2x128xf32>
      %13 = tpu.matmul %11, %12, %cst_13 {dimension_numbers = #tpu.dot_dimension_numbers<[1], [0], [0], [1], [0, 0, 1, 1], [], []>} : vector<2x256xf32>, vector<256x128xf32>, vector<2x128xf32> -> vector<2x128xf32>
      %c0_14 = arith.constant 0 : index
      %c0_15 = arith.constant 0 : index
      %14 = vector.load %arg4[%c0_14, %c0_15] : memref<1x128xf32, #tpu.memory_space<vmem>>, vector<1x128xf32>
      %15 = vector.broadcast %14 : vector<1x128xf32> to vector<2x128xf32>
      %16 = arith.addf %13, %15 : vector<2x128xf32>
      %17 = vector.shape_cast %16 : vector<2x128xf32> to vector<1x2x128xf32>
      %c0_16 = arith.constant 0 : index
      %c0_17 = arith.constant 0 : index
      %c0_18 = arith.constant 0 : index
      %18 = vector.load %arg5[%c0_16, %c0_17, %c0_18] : memref<1x2x128xf32, #tpu.memory_space<vmem>>, vector<1x2x128xf32>
      tpu.vector_store %arg5[%c0_16, %c0_17, %c0_18], %17 {strides = array<i32>} : memref<1x2x128xf32, #tpu.memory_space<vmem>>, vector<1x2x128xf32>,
    } else {
    }
    return
  }
  func.func @transform_0(%arg0: i32, %arg1: i32) -> (i32, i32, i32) {
    %c0_i32 = arith.constant 0 : i32
    %c0_i32_0 = arith.constant 0 : i32
    return %arg0, %c0_i32, %arg1 : i32, i32, i32
  }
  func.func @transform_1(%arg0: i32, %arg1: i32) -> (i32, i32) {
    %c0_i32 = arith.constant 0 : i32
    %c0_i32_0 = arith.constant 0 : i32
    %c0_i32_1 = arith.constant 0 : i32
    return %c0_i32, %c0_i32_0 : i32, i32
  }
  func.func @transform_2(%arg0: i32, %arg1: i32) -> (i32, i32) {
    %c0_i32 = arith.constant 0 : i32
    %c0_i32_0 = arith.constant 0 : i32
    %c0_i32_1 = arith.constant 0 : i32
    return %c0_i32, %c0_i32_0 : i32, i32
  }
  func.func @transform_3(%arg0: i32, %arg1: i32) -> (i32, i32, i32) {
    %c0_i32 = arith.constant 0 : i32
    %c0_i32_0 = arith.constant 0 : i32
    %c0_i32_1 = arith.constant 0 : i32
    return %arg0, %c0_i32, %c0_i32_0 : i32, i32, i32
  }
}

</mosaic_0001>

<bundles_post_ra>
// kernel: tpu_custom_call.1
= control target key start
LH: loop header
LB: loop body
LE: loop exit
PB: predicated region body
PF: predicated region fallthrough
CT: control target
= control target key end

     0   :  { %8 = vsyncpa [#allocation4], 0  ;;  %s5880_s0 = inlined_call_operand.vmem [shape: f32[4,256,64], index: 0, kind: input, shape index: {}]   ;;  %s5881_s1 = inlined_call_operand.vmem [shape: f32[256,128], index: 1, kind: input, shape index: {}]   ;;  %s5882_s2 = inlined_call_operand.vmem [shape: f32[1,128], index: 2, kind: input, shape index: {}]   ;;  %s5883_s3 = inlined_call_operand.hbm [shape: f32[2,2,128], index: 3, kind: output, shape index: {}]  }
   0x1   :  { %10 = vsyncpa [#allocation4 + $0x1], 0  ;;  %s4425_s12 = smov 0   ;;  %s4427_s13 = smov 0  }
   0x2   :  { %s4429_s14 = smov 0   ;;  %s4431_s15 = smov 0  }
   0x3   :  { %s4433_s16 = smov 0   ;;  %s4435_s17 = smov 0  }
   0x4 LB: > { %s4170_s18 = sadd.s32 4294967295, %s4395_s17   ;;  %s4171_s19 = sadd.s32 4294967294, %s4395_s17   ;;  %s4395_s17 = sphi %s4435_s17, %s16_s17   ;;  %s4391_s16 = sphi %s4433_s16, %s5890_s16   ;;  %s4387_s15 = sphi %s4431_s15, %s5889_s15   ;;  %s4383_s14 = sphi %s4429_s14, %s5888_s14   ;;  %s4379_s13 = sphi %s4427_s13, %s5887_s13   ;;  %s4375_s12 = sphi %s4425_s12, %s5886_s12  }
   0x5   : > { %s28_s20 = sadd.s32 1, %s4391_s16  ;;  %s105_s21 = sadd.s32 1, %s4383_s14 }
   0x6   : > { %p30_p0 = scmp.ge.s32.totalorder %s28_s20, 2  ;;  %p115_p1 = scmp.ne.s32.totalorder %s4383_s14, %s4379_s13 }
   0x7   : > { %p116_p2 = scmp.eq.s32.totalorder %s4170_s18, 1  ;;  %p121_p3 = scmp.ne.s32.totalorder %s4379_s13, %s4375_s12 }
   0x8   : > { %s5892_s20 = smov (%p30_p0, %s28_s20), 0  ;;  %p122_p5 = scmp.eq.s32.totalorder %s4171_s19, 1 }
   0x9   : > { %p4465_p4 = por %p116_p2, %p115_p1  ;;  %s102_s23 = ssub.s32 %s4391_s16, %s5892_s20 }
   0xa   : > { %p4174_p6 = scmp.ge.s32.totalorder %s4395_s17, 1  ;;  %p103_p7 = scmp.eq.s32.totalorder %s102_s23, 0 }
   0xb   : > { %p4472_p8 = por %p122_p5, %p121_p3  ;;  %p159_p9 = scmp.lt.s32.totalorder %s4395_s17, 3 }
   0xc   : > { %s4478_s25 = scalar_select %p103_p7, %s4383_s14, %s105_s21  }
   0xd   : > { %p160_p10 = pnand %p4174_p6, %p159_p9 }
   0xe   : > { %s4176_s26 = sshll.u32 (!%p160_p10), %s4387_s15, 1  ;;  %vm267_vm0 = vcmask (!%p160_p10), 523264   ;;  %vm3607_vm1 = vcmask (!%p160_p10), 130112   ;;  %vm3614_vm2 = vcmask (!%p160_p10), 195712   ;;  %vm3621_vm3 = vcmask (!%p160_p10), 261312   ;;  %s4182_s4 = sshll.u32 (!%p160_p10), %s4387_s15, 5 }
   0xf   : > { %163 = sbr.rel (%p160_p10) target bundleno = 712 (0x2c8), region = 32  ;;  %p188_p11 = scmp.lt.s32.totalorder (!%p160_p10), %s4176_s26, 3  ;;  %vm3628_vm4 = vcmask (!%p160_p10), 326912   ;;  %vm3635_vm5 = vcmask (!%p160_p10), 392512   ;;  %vm3642_vm6 = vcmask (!%p160_p10), 458112   ;;  %vm3649_vm7 = vcmask (!%p160_p10), 523712  }
  0x10   : > { %vm3656_vm8 = vcmask (!%p160_p10), 589312   ;;  %vm3663_vm9 = vcmask (!%p160_p10), 654912   ;;  %vm3670_vm10 = vcmask (!%p160_p10), 720512   ;;  %vm3677_vm11 = vcmask (!%p160_p10), 786112   ;;  %s5833_s9 = scalar_lea.hbm (!%p160_p10), %s5883_s3, %s4182_s4  ;;  %s4404_s15 = smov (!%p160_p10), [#allocation3]  }
  0x11   : > { %vm3684_vm12 = vcmask (!%p160_p10), 851712   ;;  %vm3691_vm13 = vcmask (!%p160_p10), 917312   ;;  %vm3698_vm14 = vcmask (!%p160_p10), 982912   ;;  %vm3705_vm15 = vcmask (!%p160_p10), 1048512   ;;  %s4321_s18 = sshll.u32 (!%p160_p10), %s4404_s15, 4  ;;  %s4322_s18 = int_to_ptr.vmem [resolvable:$false] %s4321_s18 }
  0x12   : > { %s4323_s19 = scalar_lea.vmem (!%p160_p10), %s4322_s18, 64 }
  0x16   : > { %s5894_s26 = smov (!%p188_p11, %s4176_s26), 3 }
  0x17   : > { %s4185_s27 = sshll.u32 %s5894_s26, 8 }
  0x18   : > { %s4484_s30 = scalar_lea.vmem %s5880_s0, %s4185_s27  ;;  %s184_s27 = sand.u32 1, %s4379_s13  }
  0x19   : > { %v218_v0 = vld [vmem:[%s4484_s30 + $0x80] sm:$0xff]  ;;  %v219_v2 = vld [vmem:[%s4484_s30 + $0x88] sm:$0xff]  ;;  %v220_v13 = vld [vmem:[%s4484_s30 + $0x90] sm:$0xff]  ;;  %s4175_s28 = sshll.u32 %s184_s27, 1  ;;  %s4084_s10 = scalar_lea.sflag [#allocation4], %s184_s27 }
  0x1a   : > { %v202_v1 = vld [vmem:[%s4484_s30] sm:$0xff]  ;;  %v316_v3 = vsel %vm267_vm0, %v218_v0, 0.0  ;;  %v203_v5 = vld [vmem:[%s4484_s30 + $0x8] sm:$0xff]  ;;  %v319_v6 = vsel %vm267_vm0, %v219_v2, 0.0  ;;  %v252_v15 = vld [vmem:[%s4484_s30 + $0x190] sm:$0xff]  ;;  %v322_v19 = vsel %vm267_vm0, %v220_v13, 0.0 }
  0x1b   : > { %v268_v4 = vsel %vm267_vm0, %v202_v1, 0.0  ;;  %317 = vadd.xlane.f32.xlu1 %v316_v3  ;;  %v271_v7 = vsel %vm267_vm0, %v203_v5, 0.0  ;;  %v235_v8 = vld [vmem:[%s4484_s30 + $0x108] sm:$0xff]  ;;  %v234_v9 = vld [vmem:[%s4484_s30 + $0x100] sm:$0xff]  ;;  %v204_v16 = vld [vmem:[%s4484_s30 + $0x10] sm:$0xff]  ;;  %v4508_v21 = vsel %vm267_vm0, %v252_v15, 0.0 }
  0x1c   : > { %269 = vadd.xlane.f32.xlu0 %v268_v4  ;;  %v251_v10 = vld [vmem:[%s4484_s30 + $0x188] sm:$0xff]  ;;  %v367_v11 = vsel %vm267_vm0, %v235_v8, 0.0  ;;  %v364_v12 = vsel %vm267_vm0, %v234_v9, 0.0  ;;  %v250_v14 = vld [vmem:[%s4484_s30 + $0x180] sm:$0xff]  ;;  %v236_v17 = vld [vmem:[%s4484_s30 + $0x110] sm:$0xff]  ;;  %v274_v23 = vsel %vm267_vm0, %v204_v16, 0.0 }
  0x1d   : > { %v415_v18 = vsel %vm267_vm0, %v251_v10, 0.0  ;;  %v412_v20 = vsel %vm267_vm0, %v250_v14, 0.0  ;;  %v226_v22 = vld [vmem:[%s4484_s30 + $0xc0] sm:$0xff]  ;;  %v4513_v24 = vsel %vm267_vm0, %v236_v17, 0.0  ;;  %v227_v28 = vld [vmem:[%s4484_s30 + $0xc8] sm:$0xff]  ;;  %v228_v38 = vld [vmem:[%s4484_s30 + $0xd0] sm:$0xff] }
  0x1e   : > { %v4516_v25 = vsel %vm267_vm0, %v226_v22, 0.0  ;;  %v258_v26 = vld [vmem:[%s4484_s30 + $0x1c0] sm:$0xff]  ;;  %v4528_v31 = vsel %vm267_vm0, %v227_v28, 0.0  ;;  %v259_v33 = vld [vmem:[%s4484_s30 + $0x1c8] sm:$0xff]  ;;  %v260_v40 = vld [vmem:[%s4484_s30 + $0x1d0] sm:$0xff]  ;;  %v4546_v41 = vsel %vm267_vm0, %v228_v38, 0.0 }
  0x1f   : > { %320 = vadd.xlane.f32.xlu1 %v319_v6  ;;  %v210_v27 = vld [vmem:[%s4484_s30 + $0x40] sm:$0xff]  ;;  %v4522_v29 = vsel %vm267_vm0, %v258_v26, 0.0  ;;  %v211_v34 = vld [vmem:[%s4484_s30 + $0x48] sm:$0xff]  ;;  %v4537_v36 = vsel %vm267_vm0, %v259_v33, 0.0  ;;  %v4552_v43 = vsel %vm267_vm0, %v260_v40, 0.0  ;;  %v212_v44 = vld [vmem:[%s4484_s30 + $0x50] sm:$0xff] }
  0x20   : > { %272 = vadd.xlane.f32.xlu0 %v271_v7  ;;  %v4525_v30 = vsel %vm267_vm0, %v210_v27, 0.0  ;;  %v242_v32 = vld [vmem:[%s4484_s30 + $0x140] sm:$0xff]  ;;  %v4540_v37 = vsel %vm267_vm0, %v211_v34, 0.0  ;;  %v243_v39 = vld [vmem:[%s4484_s30 + $0x148] sm:$0xff]  ;;  %v229_v45 = vld [vmem:[%s4484_s30 + $0xd8] sm:$0xff]  ;;  %v4558_v47 = vsel %vm267_vm0, %v212_v44, 0.0 }
  0x21   : > { %v4534_v35 = vsel %vm267_vm0, %v242_v32, 0.0  ;;  %v4549_v42 = vsel %vm267_vm0, %v243_v39, 0.0  ;;  %v244_v46 = vld [vmem:[%s4484_s30 + $0x150] sm:$0xff]  ;;  %v4561_v48 = vsel %vm267_vm0, %v229_v45, 0.0  ;;  %v261_v50 = vld [vmem:[%s4484_s30 + $0x1d8] sm:$0xff]  ;;  %v230_v52 = vld [vmem:[%s4484_s30 + $0xe0] sm:$0xff] }
  0x22   : > { %v4564_v49 = vsel %vm267_vm0, %v244_v46, 0.0  ;;  %v213_v51 = vld [vmem:[%s4484_s30 + $0x58] sm:$0xff]  ;;  %v4570_v53 = vsel %vm267_vm0, %v261_v50, 0.0  ;;  %v4576_v55 = vsel %vm267_vm0, %v230_v52, 0.0  ;;  %v262_v57 = vld [vmem:[%s4484_s30 + $0x1e0] sm:$0xff]  ;;  %v231_v62 = vld [vmem:[%s4484_s30 + $0xe8] sm:$0xff] }
  0x23   : > { %368 = vadd.xlane.f32.xlu1 %v367_v11  ;;  %v4573_v54 = vsel %vm267_vm0, %v213_v51, 0.0  ;;  %v245_v56 = vld [vmem:[%s4484_s30 + $0x158] sm:$0xff]  ;;  %v214_v58 = vld [vmem:[%s4484_s30 + $0x60] sm:$0xff]  ;;  %v4585_v60 = vsel %vm267_vm0, %v262_v57, 0.0  ;;  %v263_v0 = vld [vmem:[%s4484_s30 + $0x1e8] sm:$0xff]  ;;  %v4596_v3 = vsel %vm267_vm0, %v231_v62, 0.0 }
  0x24   : > { %365 = vadd.xlane.f32.xlu0 %v364_v12  ;;  %v4582_v59 = vsel %vm267_vm0, %v245_v56, 0.0  ;;  %v4588_v61 = vsel %vm267_vm0, %v214_v58, 0.0  ;;  %v246_v63 = vld [vmem:[%s4484_s30 + $0x160] sm:$0xff]  ;;  %v221_v1 = vld [vmem:[%s4484_s30 + $0x98] sm:$0xff]  ;;  %v4602_v5 = vsel %vm267_vm0, %v263_v0, 0.0  ;;  %v215_v6 = vld [vmem:[%s4484_s30 + $0x68] sm:$0xff] }
  0x25   : > { %v205_v2 = vld [vmem:[%s4484_s30 + $0x18] sm:$0xff]  ;;  %v4599_v4 = vsel %vm267_vm0, %v246_v63, 0.0  ;;  %v232_v7 = vld [vmem:[%s4484_s30 + $0xf0] sm:$0xff]  ;;  %v247_v8 = vld [vmem:[%s4484_s30 + $0x168] sm:$0xff]  ;;  %v4608_v9 = vsel %vm267_vm0, %v215_v6, 0.0  ;;  %v325_v32 = vsel %vm267_vm0, %v221_v1, 0.0 }
  0x26   : > { %v4611_v10 = vsel %vm267_vm0, %v232_v7, 0.0  ;;  %v4614_v11 = vsel %vm267_vm0, %v247_v8, 0.0  ;;  %v264_v12 = vld [vmem:[%s4484_s30 + $0x1f0] sm:$0xff]  ;;  %v233_v14 = vld [vmem:[%s4484_s30 + $0xf8] sm:$0xff]  ;;  %v277_v33 = vsel %vm267_vm0, %v205_v2, 0.0  ;;  %v4397_v34 = vmov 0  }
  0x27   : > { %416 = vadd.xlane.f32.xlu1 %v415_v18  ;;  %v216_v13 = vld [vmem:[%s4484_s30 + $0x70] sm:$0xff]  ;;  %v4620_v15 = vsel %vm267_vm0, %v264_v12, 0.0  ;;  %v4626_v17 = vsel %vm267_vm0, %v233_v14, 0.0  ;;  %v249_v27 = vld [vmem:[%s4484_s30 + $0x178] sm:$0xff]  ;;  %4315 = vset.pattern.permute.xlu0 %v4397_v34  ;;  %v222_v40 = vld [vmem:[%s4484_s30 + $0xa0] sm:$0xff]  ;;  %s186_s5 = scalar_lea.vmem [#allocation3], %s4175_s28 }
  0x28   : > { %413 = vadd.xlane.f32.xlu0 %v412_v20  ;;  %v4623_v16 = vsel %vm267_vm0, %v216_v13, 0.0  ;;  %v248_v18 = vld [vmem:[%s4484_s30 + $0x170] sm:$0xff]  ;;  %v217_v20 = vld [vmem:[%s4484_s30 + $0x78] sm:$0xff]  ;;  %v4644_v28 = vsel %vm267_vm0, %v249_v27, 0.0  ;;  %4316 = vset.pattern.permute.xlu1 %v4397_v34  ;;  %v206_v44 = vld [vmem:[%s4484_s30 + $0x20] sm:$0xff]  ;;  %v328_v45 = vsel %vm267_vm0, %v222_v40, 0.0 }
  0x29   : > { %v4632_v22 = vsel %vm267_vm0, %v248_v18, 0.0  ;;  %v4638_v26 = vsel %vm267_vm0, %v217_v20, 0.0  ;;  %v253_v38 = vld [vmem:[%s4484_s30 + $0x198] sm:$0xff]  ;;  %v280_v46 = vsel %vm267_vm0, %v206_v44, 0.0  ;;  %v254_v50 = vld [vmem:[%s4484_s30 + $0x1a0] sm:$0xff]  ;;  %v223_v57 = vld [vmem:[%s4484_s30 + $0xa8] sm:$0xff] }
  0x2a   : > { %v237_v39 = vld [vmem:[%s4484_s30 + $0x118] sm:$0xff]  ;;  %v238_v51 = vld [vmem:[%s4484_s30 + $0x120] sm:$0xff]  ;;  %v424_v52 = vsel %vm267_vm0, %v254_v50, 0.0  ;;  %v207_v58 = vld [vmem:[%s4484_s30 + $0x28] sm:$0xff]  ;;  %v331_v62 = vsel %vm267_vm0, %v223_v57, 0.0  ;;  %s4097_s6 = sshll.u32 %s186_s5, 4  ;;  %s5835_s6 = int_to_ptr.vmem [resolvable:$true] %s4097_s6 }
  0x2b   : > { %323 = vadd.xlane.f32.xlu1 %v322_v19  ;;  %v265_v19 = vld [vmem:[%s4484_s30 + $0x1f8] sm:$0xff]  ;;  %v376_v56 = vsel %vm267_vm0, %v238_v51, 0.0  ;;  %v283_v63 = vsel %vm267_vm0, %v207_v58, 0.0  ;;  %v255_v0 = vld [vmem:[%s4484_s30 + $0x1a8] sm:$0xff]  ;;  %v224_v7 = vld [vmem:[%s4484_s30 + $0xb0] sm:$0xff]  ;;  %s4317_s11 = scalar_lea.vmem %s5835_s6, 32  ;;  %p4324_p1 = scmp.lt.s32.totalorder %s5835_s6, %s4322_s18 }
  0x2c   : > { %275 = vadd.xlane.f32.xlu0 %v274_v23  ;;  %v4635_v23 = vsel %vm267_vm0, %v265_v19, 0.0  ;;  %v239_v1 = vld [vmem:[%s4484_s30 + $0x128] sm:$0xff]  ;;  %v427_v2 = vsel %vm267_vm0, %v255_v0, 0.0  ;;  %v208_v8 = vld [vmem:[%s4484_s30 + $0x30] sm:$0xff]  ;;  %v334_v12 = vsel %vm267_vm0, %v224_v7, 0.0  ;;  %v225_v27 = vld [vmem:[%s4484_s30 + $0xb8] sm:$0xff]  ;;  %p4318_p12 = scmp.ne.s32.totalorder %s5835_s6, %s4317_s11  ;;  %p4325_p2 = scmp.lt.s32.totalorder %s4323_s19, %s4317_s11 }
  0x2d   : > { %v379_v6 = vsel %vm267_vm0, %v239_v1, 0.0  ;;  %v286_v13 = vsel %vm267_vm0, %v208_v8, 0.0  ;;  %v256_v14 = vld [vmem:[%s4484_s30 + $0x1b0] sm:$0xff] }
  0x2e   : > { %v240_v18 = vld [vmem:[%s4484_s30 + $0x130] sm:$0xff]  ;;  %v430_v19 = vsel %vm267_vm0, %v256_v14, 0.0  ;;  %p4319_p13 = pnand %p4318_p12, %p4465_p4  ;;  %p4326_p3 = por %p4325_p2, %p4324_p1 }
  0x2f   : > { %419 = vadd.xlane.f32.xlu1 %v4508_v21  ;;  %v421_v21 = vsel %vm267_vm0, %v253_v38, 0.0  ;;  %v382_v20 = vsel %vm267_vm0, %v240_v18, 0.0  ;;  %v257_v38 = vld [vmem:[%s4484_s30 + $0x1b8] sm:$0xff] }
  0x30   : > { %371 = vadd.xlane.f32.xlu0 %v4513_v24  ;;  %v373_v24 = vsel %vm267_vm0, %v237_v39, 0.0  ;;  %v241_v39 = vld [vmem:[%s4484_s30 + $0x138] sm:$0xff]  ;;  %p4320_p0 = pneg %p4319_p13 }
  0x32   : > { %p4327_p5 = pnand %p4326_p3, %p4320_p0 }
  0x33   : > { %326 = vadd.xlane.f32.xlu1 %v325_v32  ;;  %v209_v32 = vld [vmem:[%s4484_s30 + $0x38] sm:$0xff] }
  0x34   : > { %278 = vadd.xlane.f32.xlu0 %v277_v33  ;;  %v337_v33 = vsel %vm267_vm0, %v225_v27, 0.0  ;;  %v289_v34 = vsel %vm267_vm0, %v209_v32, 0.0 }
  0x37   : > { %422 = vadd.xlane.f32.xlu1 %v421_v21  ;;  %v433_v21 = vsel %vm267_vm0, %v257_v38, 0.0 }
  0x38   : > { %374 = vadd.xlane.f32.xlu0 %v373_v24  ;;  %v385_v24 = vsel %vm267_vm0, %v241_v39, 0.0  ;;  %vm3944_vm0 = vcmask 1041409  }
  0x3b   : > { %329 = vadd.xlane.f32.xlu1 %v328_v45 }
  0x3c   : > { %281 = vadd.xlane.f32.xlu0 %v280_v46 }
  0x3f   : > { %425 = vadd.xlane.f32.xlu1 %v424_v52 }
  0x40   : > { %377 = vadd.xlane.f32.xlu0 %v376_v56 }
  0x43   : > { %332 = vadd.xlane.f32.xlu1 %v331_v62 }
  0x44   : > { %284 = vadd.xlane.f32.xlu0 %v283_v63 }
  0x47   : > { %428 = vadd.xlane.f32.xlu1 %v427_v2 }
  0x48   : > { %380 = vadd.xlane.f32.xlu0 %v379_v6 }
  0x4b   : > { %335 = vadd.xlane.f32.xlu1 %v334_v12 }
  0x4c   : > { %287 = vadd.xlane.f32.xlu0 %v286_v13 }
  0x4f   : > { %431 = vadd.xlane.f32.xlu1 %v430_v19 }
  0x50   : > { %383 = vadd.xlane.f32.xlu0 %v382_v20 }
  0x53   : > { %338 = vadd.xlane.f32.xlu1 %v337_v33 }
  0x54   : > { %290 = vadd.xlane.f32.xlu0 %v289_v34 }
  0x57   : > { %434 = vadd.xlane.f32.xlu1 %v433_v21 }
  0x58   : > { %386 = vadd.xlane.f32.xlu0 %v385_v24 }
  0x5b   : > { %341 = vadd.xlane.f32.xlu1 %v4516_v25  ;;  %v527_v25 = vlaneseq }
  0x5c   : > { %293 = vadd.xlane.f32.xlu0 %v4525_v30 }
  0x5f   : > { %437 = vadd.xlane.f32.xlu1 %v4522_v29  ;;  %v4398_v29 = vmov 269488144  }
  0x60   : > { %389 = vadd.xlane.f32.xlu0 %v4534_v35  ;;  %v525_v30 = vunpack.c.l.s4 %v4398_v29 }
  0x63   : > { %344 = vadd.xlane.f32.xlu1 %v4528_v31  ;;  %v4399_v31 = vmov 842150450  }
  0x64   : > { %296 = vadd.xlane.f32.xlu0 %v4540_v37  ;;  %v532_v35 = vunpack.c.l.s4 %v4399_v31 }
  0x67   : > { %440 = vadd.xlane.f32.xlu1 %v4537_v36  ;;  %v4400_v36 = vmov 1414812756  }
  0x68   : > { %392 = vadd.xlane.f32.xlu0 %v4549_v42  ;;  %v539_v37 = vunpack.c.l.s4 %v4400_v36 }
  0x6b   : > { %347 = vadd.xlane.f32.xlu1 %v4546_v41  ;;  %v4401_v41 = vmov 1987475062  }
  0x6c   : > { %299 = vadd.xlane.f32.xlu0 %v4558_v47  ;;  %v546_v42 = vunpack.c.l.s4 %v4401_v41  ;;  %v526_v47 = vunpack.c.0.s8 %v525_v30 }
  0x6f   : > { %443 = vadd.xlane.f32.xlu1 %v4552_v43  ;;  %v4717_v43 = vshrl.u32 %v527_v25, 7 }
  0x70   : > { %395 = vadd.xlane.f32.xlu0 %v4564_v49  ;;  %v540_v49 = vunpack.c.0.s8 %v539_v37 }
  0x73   : > { %350 = vadd.xlane.f32.xlu1 %v4561_v48  ;;  %v533_v48 = vunpack.c.0.s8 %v532_v35 }
  0x74   : > { %302 = vadd.xlane.f32.xlu0 %v4573_v54  ;;  %v4402_v54 = vmov 1983009808  }
  0x77   : > { %446 = vadd.xlane.f32.xlu1 %v4570_v53  ;;  %v547_v53 = vunpack.c.0.s8 %v546_v42 }
  0x78   : > { %398 = vadd.xlane.f32.xlu0 %v4582_v59  ;;  %v4720_v59 = vsub.s32 %v526_v47, %v4717_v43 }
  0x7b   : > { %353 = vadd.xlane.f32.xlu1 %v4576_v55  ;;  %v2319_v55 = vunpack.c.l.s4 %v4402_v54 }
  0x7c   : > { %305 = vadd.xlane.f32.xlu0 %v4588_v61  ;;  %v4726_v61 = vsub.s32 %v540_v49, %v4717_v43 }
  0x7f   : > { %449 = vadd.xlane.f32.xlu1 %v4585_v60  ;;  %v4723_v60 = vsub.s32 %v533_v48, %v4717_v43 }
  0x80   : > { %401 = vadd.xlane.f32.xlu0 %v4599_v4  ;;  %v2320_v4 = vunpack.c.0.s8 %v2319_v55 }
  0x83   : > { %356 = vadd.xlane.f32.xlu1 %v4596_v3  ;;  %v4729_v3 = vsub.s32 %v547_v53, %v4717_v43 }
  0x84   : > { %308 = vadd.xlane.f32.xlu0 %v4608_v9 }
  0x87   : > { %452 = vadd.xlane.f32.xlu1 %v4602_v5 }
  0x88   : > { %404 = vadd.xlane.f32.xlu0 %v4614_v11 }
  0x8b   : > { %359 = vadd.xlane.f32.xlu1 %v4611_v10 }
  0x8c   : > { %311 = vadd.xlane.f32.xlu0 %v4623_v16 }
  0x8f   : > { %455 = vadd.xlane.f32.xlu1 %v4620_v15 }
  0x90   : > { %407 = vadd.xlane.f32.xlu0 %v4632_v22 }
  0x93   : > { %362 = vadd.xlane.f32.xlu1 %v4626_v17 }
  0x94   : > { %314 = vadd.xlane.f32.xlu0 %v4638_v26 }
  0x97   : > { %458 = vadd.xlane.f32.xlu1 %v4635_v23 }
  0x98   : > { %410 = vadd.xlane.f32.xlu0 %v4644_v28  ;;  %v4740_v28 = vsub.s32 %v2320_v4, %v4717_v43 }
  0xa8   : > { %v318_v5 = vpop.xlane.xlu1 %317 }
  0xa9   : > { %v270_v9 = vpop.xlane.xlu0 %269  ;;  %v978_v10 = vrot.slane %v318_v5, %v4720_v59  ;;  %v985_v11 = vrot.slane %v318_v5, %v4723_v60  ;;  %v992_v15 = vrot.slane %v318_v5, %v4726_v61  ;;  %v999_v16 = vrot.slane %v318_v5, %v4729_v3 }
  0xaa   : > { %v530_v17 = vrot.slane %v270_v9, %v4720_v59  ;;  %v537_v22 = vrot.slane %v270_v9, %v4723_v60  ;;  %v544_v23 = vrot.slane %v270_v9, %v4726_v61  ;;  %v551_v26 = vrot.slane %v270_v9, %v4729_v3 }
  0xab   : > { %v2588_v50 = vcombine.low %v978_v10, %v985_v11  ;;  %v2589_v51 = vcombine.low %v992_v15, %v999_v16 }
  0xac   : > { %v321_v40 = vpop.xlane.xlu1 %320  ;;  %v2316_v45 = vcombine.low %v530_v17, %v537_v22  ;;  %v2317_v46 = vcombine.low %v544_v23, %v551_v26 }
  0xad   : > { %v273_v44 = vpop.xlane.xlu0 %272  ;;  %v1006_v52 = vrot.slane %v321_v40, %v4720_v59  ;;  %v1013_v56 = vrot.slane %v321_v40, %v4723_v60  ;;  %v1020_v57 = vrot.slane %v321_v40, %v4726_v61  ;;  %v1027_v58 = vrot.slane %v321_v40, %v4729_v3 }
  0xae   : > { %v558_v62 = vrot.slane %v273_v44, %v4720_v59  ;;  %v565_v63 = vrot.slane %v273_v44, %v4723_v60  ;;  %v572_v0 = vrot.slane %v273_v44, %v4726_v61  ;;  %v579_v1 = vrot.slane %v273_v44, %v4729_v3 }
  0xaf   : > { %v2324_v2 = vrot.slane %v2316_v45, %v4740_v28  ;;  %v2331_v6 = vrot.slane %v2317_v46, %v4740_v28  ;;  %v2596_v14 = vrot.slane %v2588_v50, %v4740_v28  ;;  %v2603_v19 = vrot.slane %v2589_v51, %v4740_v28 }
  0xb0   : > { %v369_v7 = vpop.xlane.xlu1 %368  ;;  %v2333_v8 = vcombine.low %v558_v62, %v565_v63  ;;  %v2334_v12 = vcombine.low %v572_v0, %v579_v1  ;;  %v2605_v20 = vcombine.low %v1006_v52, %v1013_v56  ;;  %v2606_v27 = vcombine.low %v1020_v57, %v1027_v58 }
  0xb1   : > { %v366_v13 = vpop.xlane.xlu0 %365  ;;  %v1454_v18 = vrot.slane %v369_v7, %v4720_v59  ;;  %v1461_v32 = vrot.slane %v369_v7, %v4723_v60  ;;  %v2332_v33 = vcombine.low %v2324_v2, %v2331_v6  ;;  %v1468_v36 = vrot.slane %v369_v7, %v4726_v61 }
  0xb2   : > { %v2341_v34 = vrot.slane %v2333_v8, %v4740_v28  ;;  %v2348_v38 = vrot.slane %v2334_v12, %v4740_v28  ;;  %v1426_v39 = vrot.slane %v366_v13, %v4720_v59  ;;  %v1433_v21 = vrot.slane %v366_v13, %v4723_v60 }
  0xb3   : > { %v1440_v24 = vrot.slane %v366_v13, %v4726_v61  ;;  %v1447_v29 = vrot.slane %v366_v13, %v4729_v3  ;;  %3405 = vperm.xlu0 %4315, %v2332_v33   ;;  %v1475_v37 = vrot.slane %v369_v7, %v4729_v3  ;;  %v2604_v41 = vcombine.low %v2596_v14, %v2603_v19 }
  0xb4   : > { %v4762_v30 = vpop.xlane.xlu1 %416  ;;  %v2349_v31 = vcombine.low %v2341_v34, %v2348_v38  ;;  %v2613_v42 = vrot.slane %v2605_v20, %v4740_v28  ;;  %v2620_v47 = vrot.slane %v2606_v27, %v4740_v28  ;;  %v2860_v48 = vcombine.low %v1426_v39, %v1433_v21 }
  0xb5   : > { %v414_v35 = vpop.xlane.xlu0 %413  ;;  %v2861_v49 = vcombine.low %v1440_v24, %v1447_v29  ;;  %v2877_v53 = vcombine.low %v1454_v18, %v1461_v32  ;;  %v1902_v22 = vrot.slane %v4762_v30, %v4720_v59  ;;  %v1909_v23 = vrot.slane %v4762_v30, %v4723_v60 }
  0xb6   : > { %3408 = vperm.xlu1 %4316, %v2349_v31   ;;  %v1874_v55 = vrot.slane %v414_v35, %v4720_v59  ;;  %v1881_v4 = vrot.slane %v414_v35, %v4723_v60  ;;  %v1888_v5 = vrot.slane %v414_v35, %v4726_v61  ;;  %v1895_v9 = vrot.slane %v414_v35, %v4729_v3 }
  0xb7   : > { %v2621_v26 = vcombine.low %v2613_v42, %v2620_v47  ;;  %v2878_v40 = vcombine.low %v1468_v36, %v1475_v37  ;;  %v2868_v46 = vrot.slane %v2860_v48, %v4740_v28  ;;  %v2875_v50 = vrot.slane %v2861_v49, %v4740_v28 }
  0xb8   : > { %v324_v54 = vpop.xlane.xlu1 %323  ;;  %v2885_v56 = vrot.slane %v2877_v53, %v4740_v28  ;;  %v3132_v57 = vcombine.low %v1874_v55, %v1881_v4  ;;  %v3133_v58 = vcombine.low %v1888_v5, %v1895_v9  ;;  %v1916_v12 = vrot.slane %v4762_v30, %v4726_v61 }
  0xb9   : > { %v4772_v10 = vpop.xlane.xlu0 %275  ;;  %v1034_v11 = vrot.slane %v324_v54, %v4720_v59  ;;  %v1041_v15 = vrot.slane %v324_v54, %v4723_v60  ;;  %v1048_v16 = vrot.slane %v324_v54, %v4726_v61  ;;  %v1055_v17 = vrot.slane %v324_v54, %v4729_v3 }
  0xba   : > { %3453 = vperm.xlu1 %4316, %v2604_v41   ;;  %v2876_v7 = vcombine.low %v2868_v46, %v2875_v50  ;;  %v2892_v8 = vrot.slane %v2878_v40, %v4740_v28  ;;  %v1923_v13 = vrot.slane %v4762_v30, %v4729_v3  ;;  %v3149_v18 = vcombine.low %v1902_v22, %v1909_v23 }
  0xbb   : > { %v2622_v44 = vcombine.low %v1034_v11, %v1041_v15  ;;  %v2623_v45 = vcombine.low %v1048_v16, %v1055_v17  ;;  %v3140_v33 = vrot.slane %v3132_v57, %v4740_v28  ;;  %v3147_v34 = vrot.slane %v3133_v58, %v4740_v28 }
  0xbc   : > { %v420_v51 = vpop.xlane.xlu1 %419  ;;  %v2893_v31 = vcombine.low %v2885_v56, %v2892_v8  ;;  %v586_v35 = vrot.slane %v4772_v10, %v4720_v59  ;;  %v593_v36 = vrot.slane %v4772_v10, %v4723_v60  ;;  %v3150_v41 = vcombine.low %v1916_v12, %v1923_v13 }
  0xbd   : > { %v4784_v52 = vpop.xlane.xlu0 %371  ;;  %v1930_v62 = vrot.slane %v420_v51, %v4720_v59  ;;  %v1937_v63 = vrot.slane %v420_v51, %v4723_v60  ;;  %v1944_v0 = vrot.slane %v420_v51, %v4726_v61  ;;  %v1951_v1 = vrot.slane %v420_v51, %v4729_v3 }
  0xbe   : > { %3456 = vperm.xlu1 %4316, %v2621_v26   ;;  %v2630_v2 = vrot.slane %v2622_v44, %v4740_v28  ;;  %v2637_v6 = vrot.slane %v2623_v45, %v4740_v28  ;;  %v600_v42 = vrot.slane %v4772_v10, %v4726_v61  ;;  %v607_v47 = vrot.slane %v4772_v10, %v4729_v3 }
  0xbf   : > { %v3166_v14 = vcombine.low %v1930_v62, %v1937_v63  ;;  %v3167_v27 = vcombine.low %v1944_v0, %v1951_v1  ;;  %v3148_v10 = vcombine.low %v3140_v33, %v3147_v34  ;;  %v1482_v16 = vrot.slane %v4784_v52, %v4720_v59 }
  0xc0   : > { %v327_v19 = vpop.xlane.xlu1 %326  ;;  %v2638_v20 = vcombine.low %v2630_v2, %v2637_v6  ;;  %v3157_v22 = vrot.slane %v3149_v18, %v4740_v28  ;;  %v3164_v23 = vrot.slane %v3150_v41, %v4740_v28  ;;  %v1489_v26 = vrot.slane %v4784_v52, %v4723_v60 }
  0xc1   : > { %v4798_v32 = vpop.xlane.xlu0 %278  ;;  %v1062_v38 = vrot.slane %v327_v19, %v4720_v59  ;;  %v1069_v39 = vrot.slane %v327_v19, %v4723_v60  ;;  %v1076_v21 = vrot.slane %v327_v19, %v4726_v61  ;;  %v1083_v24 = vrot.slane %v327_v19, %v4729_v3 }
  0xc2   : > { %3459 = vperm.xlu0 %4315, %v2638_v20   ;;  %3501 = vperm.xlu1 %4316, %v2876_v7   ;;  %v3174_v29 = vrot.slane %v3166_v14, %v4740_v28  ;;  %v3181_v30 = vrot.slane %v3167_v27, %v4740_v28  ;;  %v2350_v50 = vcombine.low %v586_v35, %v593_v36 }
  0xc3   : > { %v2639_v37 = vcombine.low %v1062_v38, %v1069_v39  ;;  %v2640_v53 = vcombine.low %v1076_v21, %v1083_v24  ;;  %v1496_v62 = vrot.slane %v4784_v52, %v4726_v61  ;;  %v1503_v1 = vrot.slane %v4784_v52, %v4729_v3 }
  0xc4   : > { %v423_v48 = vpop.xlane.xlu1 %422  ;;  %v3182_v49 = vcombine.low %v3174_v29, %v3181_v30  ;;  %v614_v2 = vrot.slane %v4798_v32, %v4720_v59  ;;  %v3165_v6 = vcombine.low %v3157_v22, %v3164_v23  ;;  %v2351_v14 = vcombine.low %v600_v42, %v607_v47 }
  0xc5   : > { %v4816_v54 = vpop.xlane.xlu0 %374  ;;  %v1958_v55 = vrot.slane %v423_v48, %v4720_v59  ;;  %v1965_v4 = vrot.slane %v423_v48, %v4723_v60  ;;  %v1972_v5 = vrot.slane %v423_v48, %v4726_v61  ;;  %v1979_v9 = vrot.slane %v423_v48, %v4729_v3 }
  0xc6   : > { %3555 = vperm.xlu0 %4315, %v3182_v49   ;;  %3504 = vperm.xlu1 %4316, %v2893_v31   ;;  %v2647_v11 = vrot.slane %v2639_v37, %v4740_v28  ;;  %v2654_v15 = vrot.slane %v2640_v53, %v4740_v28  ;;  %v2358_v18 = vrot.slane %v2350_v50, %v4740_v28 }
  0xc7   : > { %v3183_v17 = vcombine.low %v1958_v55, %v1965_v4  ;;  %v3184_v45 = vcombine.low %v1972_v5, %v1979_v9  ;;  %v2365_v39 = vrot.slane %v2351_v14, %v4740_v28  ;;  %v621_v21 = vrot.slane %v4798_v32, %v4723_v60 }
  0xc8   : > { %v330_v40 = vpop.xlane.xlu1 %329  ;;  %v2655_v44 = vcombine.low %v2647_v11, %v2654_v15  ;;  %v628_v24 = vrot.slane %v4798_v32, %v4726_v61  ;;  %v635_v29 = vrot.slane %v4798_v32, %v4729_v3  ;;  %v1510_v30 = vrot.slane %v4816_v54, %v4720_v59 }
  0xc9   : > { %v4830_v46 = vpop.xlane.xlu0 %281  ;;  %v1090_v51 = vrot.slane %v330_v40, %v4720_v59  ;;  %v1097_v56 = vrot.slane %v330_v40, %v4723_v60  ;;  %v1104_v57 = vrot.slane %v330_v40, %v4726_v61  ;;  %v1111_v58 = vrot.slane %v330_v40, %v4729_v3 }
  0xca   : > { %3462 = vperm.xlu0 %4315, %v2655_v44   ;;  %3549 = vperm.xlu1 %4316, %v3148_v10   ;;  %v3191_v63 = vrot.slane %v3183_v17, %v4740_v28  ;;  %v3198_v0 = vrot.slane %v3184_v45, %v4740_v28  ;;  %v2366_v36 = vcombine.low %v2358_v18, %v2365_v39 }
  0xcb   : > { %v2656_v7 = vcombine.low %v1090_v51, %v1097_v56  ;;  %v2657_v13 = vcombine.low %v1104_v57, %v1111_v58  ;;  %v2894_v4 = vcombine.low %v1482_v16, %v1489_v26  ;;  %v1517_v5 = vrot.slane %v4816_v54, %v4723_v60 }
  0xcc   : > { %v426_v8 = vpop.xlane.xlu1 %425  ;;  %v3199_v12 = vcombine.low %v3191_v63, %v3198_v0  ;;  %v1524_v9 = vrot.slane %v4816_v54, %v4726_v61  ;;  %v1531_v11 = vrot.slane %v4816_v54, %v4729_v3  ;;  %v2895_v15 = vcombine.low %v1496_v62, %v1503_v1 }
  0xcd   : > { %v4845_v19 = vpop.xlane.xlu0 %377  ;;  %v1986_v20 = vrot.slane %v426_v8, %v4720_v59  ;;  %v1993_v27 = vrot.slane %v426_v8, %v4723_v60  ;;  %v2000_v33 = vrot.slane %v426_v8, %v4726_v61  ;;  %v2007_v52 = vrot.slane %v426_v8, %v4729_v3 }
  0xce   : > { %3558 = vperm.xlu0 %4315, %v3199_v12   ;;  %3552 = vperm.xlu1 %4316, %v3165_v6   ;;  %v2664_v34 = vrot.slane %v2656_v7, %v4740_v28  ;;  %v2671_v38 = vrot.slane %v2657_v13, %v4740_v28  ;;  %v642_v10 = vrot.slane %v4830_v46, %v4720_v59 }
  0xcf   : > { %v3200_v37 = vcombine.low %v1986_v20, %v1993_v27  ;;  %v3201_v41 = vcombine.low %v2000_v33, %v2007_v52  ;;  %v2902_v23 = vrot.slane %v2894_v4, %v4740_v28  ;;  %v2909_v54 = vrot.slane %v2895_v15, %v4740_v28 }
  0xd0   : > { %v333_v31 = vpop.xlane.xlu1 %332  ;;  %v2672_v35 = vcombine.low %v2664_v34, %v2671_v38  ;;  %v2367_v57 = vcombine.low %v614_v2, %v621_v21  ;;  %v649_v58 = vrot.slane %v4830_v46, %v4723_v60  ;;  %v656_v62 = vrot.slane %v4830_v46, %v4726_v61 }
  0xd1   : > { %v4862_v42 = vpop.xlane.xlu0 %284  ;;  %v1118_v47 = vrot.slane %v333_v31, %v4720_v59  ;;  %v1125_v48 = vrot.slane %v333_v31, %v4723_v60  ;;  %v1132_v49 = vrot.slane %v333_v31, %v4726_v61  ;;  %v1139_v53 = vrot.slane %v333_v31, %v4729_v3 }
  0xd2   : > { %3465 = vperm.xlu0 %4315, %v2672_v35   ;;  %3411 = vperm.xlu1 %4316, %v2366_v36   ;;  %v3208_v32 = vrot.slane %v3200_v37, %v4740_v28  ;;  %v3215_v55 = vrot.slane %v3201_v41, %v4740_v28  ;;  %v663_v63 = vrot.slane %v4830_v46, %v4729_v3 }
  0xd3   : > { %v2673_v40 = vcombine.low %v1118_v47, %v1125_v48  ;;  %v2674_v51 = vcombine.low %v1132_v49, %v1139_v53  ;;  %v2368_v0 = vcombine.low %v628_v24, %v635_v29  ;;  %v1538_v1 = vrot.slane %v4845_v19, %v4720_v59 }
  0xd4   : > { %v429_v17 = vpop.xlane.xlu1 %428  ;;  %v3216_v22 = vcombine.low %v3208_v32, %v3215_v55  ;;  %v2910_v6 = vcombine.low %v2902_v23, %v2909_v54  ;;  %v2375_v12 = vrot.slane %v2367_v57, %v4740_v28  ;;  %v1545_v13 = vrot.slane %v4845_v19, %v4723_v60 }
  0xd5   : > { %v4879_v44 = vpop.xlane.xlu0 %380  ;;  %v2014_v16 = vrot.slane %v429_v17, %v4720_v59  ;;  %v2021_v26 = vrot.slane %v429_v17, %v4723_v60  ;;  %v2028_v45 = vrot.slane %v429_v17, %v4726_v61  ;;  %v2035_v50 = vrot.slane %v429_v17, %v4729_v3 }
  0xd6   : > { %3561 = vperm.xlu0 %4315, %v3216_v22   ;;  %v2681_v56 = vrot.slane %v2673_v40, %v4740_v28  ;;  %v2688_v8 = vrot.slane %v2674_v51, %v4740_v28  ;;  %v1552_v14 = vrot.slane %v4845_v19, %v4726_v61  ;;  %3507 = vperm.xlu1 %4316, %v2910_v6  }
  0xd7   : > { %v2382_v27 = vrot.slane %v2368_v0, %v4740_v28  ;;  %v3217_v33 = vcombine.low %v2014_v16, %v2021_v26  ;;  %v3218_v52 = vcombine.low %v2028_v45, %v2035_v50  ;;  %v2911_v39 = vcombine.low %v1510_v30, %v1517_v5 }
  0xd8   : > { %v336_v7 = vpop.xlane.xlu1 %335  ;;  %v2689_v20 = vcombine.low %v2681_v56, %v2688_v8  ;;  %v2912_v21 = vcombine.low %v1524_v9, %v1531_v11  ;;  %v1559_v24 = vrot.slane %v4845_v19, %v4729_v3  ;;  %v670_v41 = vrot.slane %v4862_v42, %v4720_v59 }
  0xd9   : > { %v4897_v2 = vpop.xlane.xlu0 %287  ;;  %v1146_v46 = vrot.slane %v336_v7, %v4720_v59  ;;  %v1153_v18 = vrot.slane %v336_v7, %v4723_v60  ;;  %v1160_v34 = vrot.slane %v336_v7, %v4726_v61  ;;  %v1167_v38 = vrot.slane %v336_v7, %v4729_v3 }
  0xda   : > { %3468 = vperm.xlu0 %4315, %v2689_v20   ;;  %v2383_v29 = vcombine.low %v2375_v12, %v2382_v27  ;;  %v3225_v35 = vrot.slane %v3217_v33, %v4740_v28  ;;  %v3232_v36 = vrot.slane %v3218_v52, %v4740_v28  ;;  %v677_v47 = vrot.slane %v4862_v42, %v4723_v60 }
  0xdb   : > { %v684_v30 = vrot.slane %v4862_v42, %v4726_v61  ;;  %v691_v48 = vrot.slane %v4862_v42, %v4729_v3  ;;  %v2919_v32 = vrot.slane %v2911_v39, %v4740_v28  ;;  %v2926_v55 = vrot.slane %v2912_v21, %v4740_v28 }
  0xdc   : > { %v432_v31 = vpop.xlane.xlu1 %431  ;;  %3414 = vperm.xlu1 %4316, %v2383_v29   ;;  %v3233_v53 = vcombine.low %v3225_v35, %v3232_v36  ;;  %v2690_v5 = vcombine.low %v1146_v46, %v1153_v18  ;;  %v2691_v9 = vcombine.low %v1160_v34, %v1167_v38  ;;  %v2384_v11 = vcombine.low %v642_v10, %v649_v58 }
  0xdd   : > { %v4912_v37 = vpop.xlane.xlu0 %383  ;;  %v2042_v49 = vrot.slane %v432_v31, %v4720_v59  ;;  %v2049_v4 = vrot.slane %v432_v31, %v4723_v60  ;;  %v2056_v15 = vrot.slane %v432_v31, %v4726_v61  ;;  %v2063_v17 = vrot.slane %v432_v31, %v4729_v3 }
  0xde   : > { %3564 = vperm.xlu0 %4315, %v3233_v53   ;;  %v2927_v22 = vcombine.low %v2919_v32, %v2926_v55  ;;  %v2385_v40 = vcombine.low %v656_v62, %v663_v63  ;;  %v1566_v26 = vrot.slane %v4879_v44, %v4720_v59  ;;  %v1573_v45 = vrot.slane %v4879_v44, %v4723_v60 }
  0xdf   : > { %v1580_v50 = vrot.slane %v4879_v44, %v4726_v61  ;;  %v698_v10 = vrot.slane %v4897_v2, %v4720_v59  ;;  %v2698_v54 = vrot.slane %v2690_v5, %v4740_v28  ;;  %v2705_v51 = vrot.slane %v2691_v9, %v4740_v28 }
  0xe0   : > { %v339_v23 = vpop.xlane.xlu1 %338  ;;  %3510 = vperm.xlu1 %4316, %v2927_v22   ;;  %v2392_v56 = vrot.slane %v2384_v11, %v4740_v28  ;;  %v2399_v57 = vrot.slane %v2385_v40, %v4740_v28  ;;  %v705_v63 = vrot.slane %v4897_v2, %v4723_v60  ;;  %v3234_v0 = vcombine.low %v2042_v49, %v2049_v4 }
  0xe1   : > { %v4928_v16 = vpop.xlane.xlu0 %290  ;;  %v1174_v58 = vrot.slane %v339_v23, %v4720_v59  ;;  %v1181_v62 = vrot.slane %v339_v23, %v4723_v60  ;;  %v2706_v6 = vcombine.low %v2698_v54, %v2705_v51  ;;  %v3235_v12 = vcombine.low %v2056_v15, %v2063_v17 }
  0xe2   : > { %v2400_v7 = vcombine.low %v2392_v56, %v2399_v57  ;;  %v2928_v46 = vcombine.low %v1538_v1, %v1545_v13  ;;  %v1587_v20 = vrot.slane %v4879_v44, %v4729_v3  ;;  %v712_v27 = vrot.slane %v4897_v2, %v4726_v61 }
  0xe3   : > { %v719_v33 = vrot.slane %v4897_v2, %v4729_v3  ;;  %v1594_v52 = vrot.slane %v4912_v37, %v4720_v59  ;;  %v1188_v34 = vrot.slane %v339_v23, %v4726_v61  ;;  %3471 = vperm.xlu0 %4315, %v2706_v6   ;;  %v1601_v1 = vrot.slane %v4912_v37, %v4723_v60 }
  0xe4   : > { %v435_v8 = vpop.xlane.xlu1 %434  ;;  %3417 = vperm.xlu1 %4316, %v2400_v7   ;;  %v3242_v13 = vrot.slane %v3234_v0, %v4740_v28  ;;  %v1195_v38 = vrot.slane %v339_v23, %v4729_v3  ;;  %v3249_v39 = vrot.slane %v3235_v12, %v4740_v28  ;;  %v2929_v2 = vcombine.low %v1552_v14, %v1559_v24 }
  0xe5   : > { %v4949_v18 = vpop.xlane.xlu0 %386  ;;  %v2936_v21 = vrot.slane %v2928_v46, %v4740_v28  ;;  %v4969_v29 = vcombine.low %v698_v10, %v705_v63  ;;  %v1608_v31 = vrot.slane %v4912_v37, %v4726_v61  ;;  %v1615_v35 = vrot.slane %v4912_v37, %v4729_v3 }
  0xe6   : > { %v2707_v49 = vcombine.low %v1174_v58, %v1181_v62  ;;  %v4979_v32 = vcombine.low %v712_v27, %v719_v33  ;;  %v2070_v19 = vrot.slane %v435_v8, %v4720_v59  ;;  %v3250_v14 = vcombine.low %v3242_v13, %v3249_v39 }
  0xe7   : > { %v2943_v24 = vrot.slane %v2929_v2, %v4740_v28  ;;  %v2077_v55 = vrot.slane %v435_v8, %v4723_v60  ;;  %v2084_v4 = vrot.slane %v435_v8, %v4726_v61  ;;  %v2091_v5 = vrot.slane %v435_v8, %v4729_v3 }
  0xe8   : > { %v4975_v36 = vpop.xlane.xlu1 %341  ;;  %v4986_v9 = vcombine.low %v1594_v52, %v1601_v1  ;;  %3567 = vperm.xlu0 %4315, %v3250_v14   ;;  %v2708_v11 = vcombine.low %v1188_v34, %v1195_v38  ;;  %v2715_v15 = vrot.slane %v2707_v49, %v4740_v28  ;;  %v2401_v17 = vcombine.low %v670_v41, %v677_v47 }
  0xe9   : > { %v4977_v53 = vpop.xlane.xlu0 %293  ;;  %v2944_v37 = vcombine.low %v2936_v21, %v2943_v24  ;;  %v4995_v22 = vcombine.low %v1608_v31, %v1615_v35  ;;  %v726_v23 = vrot.slane %v4928_v16, %v4720_v59  ;;  %v733_v40 = vrot.slane %v4928_v16, %v4723_v60 }
  0xea   : > { %v2402_v10 = vcombine.low %v684_v30, %v691_v48  ;;  %v740_v41 = vrot.slane %v4928_v16, %v4726_v61  ;;  %v747_v47 = vrot.slane %v4928_v16, %v4729_v3  ;;  %v2722_v56 = vrot.slane %v2708_v11, %v4740_v28 }
  0xeb   : > { %3513 = vperm.xlu1 %4316, %v2944_v37   ;;  %v2409_v57 = vrot.slane %v2401_v17, %v4740_v28  ;;  %v1202_v58 = vrot.slane %v4975_v36, %v4720_v59  ;;  %v1209_v42 = vrot.slane %v4975_v36, %v4723_v60  ;;  %v1216_v30 = vrot.slane %v4975_v36, %v4726_v61 }
  0xec   : > { %v5007_v54 = vpop.xlane.xlu1 %437  ;;  %v2416_v48 = vrot.slane %v2402_v10, %v4740_v28  ;;  %v1223_v62 = vrot.slane %v4975_v36, %v4729_v3  ;;  %v2723_v63 = vcombine.low %v2715_v15, %v2722_v56  ;;  %v3251_v16 = vcombine.low %v2070_v19, %v2077_v55 }
  0xed   : > { %v5009_v51 = vpop.xlane.xlu0 %389  ;;  %v3252_v0 = vcombine.low %v2084_v4, %v2091_v5  ;;  %v5026_v6 = vcombine.low %v726_v23, %v733_v40  ;;  %v2945_v8 = vcombine.low %v1566_v26, %v1573_v45  ;;  %v2946_v12 = vcombine.low %v1580_v50, %v1587_v20 }
  0xee   : > { %v2417_v7 = vcombine.low %v2409_v57, %v2416_v48  ;;  %v5039_v33 = vcombine.low %v740_v41, %v747_v47  ;;  %3474 = vperm.xlu0 %4315, %v2723_v63   ;;  %v1622_v52 = vrot.slane %v4949_v18, %v4720_v59  ;;  %v3259_v34 = vrot.slane %v3251_v16, %v4740_v28 }
  0xef   : > { %v3266_v1 = vrot.slane %v3252_v0, %v4740_v28  ;;  %v1629_v26 = vrot.slane %v4949_v18, %v4723_v60  ;;  %v1636_v44 = vrot.slane %v4949_v18, %v4726_v61  ;;  %v2953_v45 = vrot.slane %v2945_v8, %v4740_v28 }
  0xf0   : > { %v345_v46 = vpop.xlane.xlu1 %344  ;;  %3420 = vperm.xlu1 %4316, %v2417_v7   ;;  %v2960_v50 = vrot.slane %v2946_v12, %v4740_v28  ;;  %v1643_v20 = vrot.slane %v4949_v18, %v4729_v3  ;;  %v2098_v2 = vrot.slane %v5007_v54, %v4720_v59  ;;  %v2105_v19 = vrot.slane %v5007_v54, %v4723_v60 }
  0xf1   : > { %v5037_v27 = vpop.xlane.xlu0 %296  ;;  %v3267_v13 = vcombine.low %v3259_v34, %v3266_v1  ;;  %v1230_v38 = vrot.slane %v345_v46, %v4720_v59  ;;  %v1237_v39 = vrot.slane %v345_v46, %v4723_v60  ;;  %v1244_v31 = vrot.slane %v345_v46, %v4726_v61 }
  0xf2   : > { %v2961_v21 = vcombine.low %v2953_v45, %v2960_v50  ;;  %v1251_v35 = vrot.slane %v345_v46, %v4729_v3  ;;  %v2724_v18 = vcombine.low %v1202_v58, %v1209_v42  ;;  %v2725_v14 = vcombine.low %v1216_v30, %v1223_v62 }
  0xf3   : > { %3570 = vperm.xlu0 %4315, %v3267_v13   ;;  %v2426_v24 = vrot.slane %v4969_v29, %v4740_v28  ;;  %v2112_v55 = vrot.slane %v5007_v54, %v4726_v61  ;;  %v2119_v4 = vrot.slane %v5007_v54, %v4729_v3  ;;  %v5069_v5 = vcombine.low %v1622_v52, %v1629_v26 }
  0xf4   : > { %v441_v36 = vpop.xlane.xlu1 %440  ;;  %3516 = vperm.xlu1 %4316, %v2961_v21   ;;  %v2433_v37 = vrot.slane %v4979_v32, %v4740_v28  ;;  %v5073_v11 = vcombine.low %v1636_v44, %v1643_v20  ;;  %v2741_v15 = vcombine.low %v1230_v38, %v1237_v39  ;;  %v2732_v17 = vrot.slane %v2724_v18, %v4740_v28 }
  0xf5   : > { %v5059_v49 = vpop.xlane.xlu0 %392  ;;  %v2739_v23 = vrot.slane %v2725_v14, %v4740_v28  ;;  %v2742_v29 = vcombine.low %v1244_v31, %v1251_v35  ;;  %v754_v40 = vrot.slane %v4977_v53, %v4720_v59  ;;  %v761_v10 = vrot.slane %v4977_v53, %v4723_v60 }
  0xf6   : > { %v2434_v54 = vcombine.low %v2426_v24, %v2433_v37  ;;  %v768_v32 = vrot.slane %v4977_v53, %v4726_v61  ;;  %v775_v56 = vrot.slane %v4977_v53, %v4729_v3  ;;  %v2126_v58 = vrot.slane %v441_v36, %v4720_v59 }
  0xf7   : > { %v2740_v57 = vcombine.low %v2732_v17, %v2739_v23  ;;  %v2133_v42 = vrot.slane %v441_v36, %v4723_v60  ;;  %v3268_v30 = vcombine.low %v2098_v2, %v2105_v19  ;;  %v3269_v48 = vcombine.low %v2112_v55, %v2119_v4 }
  0xf8   : > { %v348_v41 = vpop.xlane.xlu1 %347  ;;  %3423 = vperm.xlu1 %4316, %v2434_v54   ;;  %v2970_v62 = vrot.slane %v4986_v9, %v4740_v28  ;;  %v2140_v63 = vrot.slane %v441_v36, %v4726_v61  ;;  %v2147_v16 = vrot.slane %v441_v36, %v4729_v3  ;;  %v1650_v0 = vrot.slane %v5009_v51, %v4720_v59 }
  0xf9   : > { %v5081_v47 = vpop.xlane.xlu0 %299  ;;  %3477 = vperm.xlu0 %4315, %v2740_v57   ;;  %v2977_v53 = vrot.slane %v4995_v22, %v4740_v28  ;;  %v1657_v7 = vrot.slane %v5009_v51, %v4723_v60  ;;  %v1664_v8 = vrot.slane %v5009_v51, %v4726_v61  ;;  %v3276_v12 = vrot.slane %v3268_v30, %v4740_v28 }
  0xfa   : > { %v3283_v9 = vrot.slane %v3269_v48, %v4740_v28  ;;  %v1671_v34 = vrot.slane %v5009_v51, %v4729_v3  ;;  %v1258_v22 = vrot.slane %v348_v41, %v4720_v59  ;;  %v1265_v26 = vrot.slane %v348_v41, %v4723_v60 }
  0xfb   : > { %v2978_v1 = vcombine.low %v2970_v62, %v2977_v53  ;;  %v3285_v44 = vcombine.low %v2126_v58, %v2133_v42  ;;  %v1272_v50 = vrot.slane %v348_v41, %v4726_v61  ;;  %v1279_v20 = vrot.slane %v348_v41, %v4729_v3 }
  0xfc   : > { %v5103_v46 = vpop.xlane.xlu1 %443  ;;  %v3284_v45 = vcombine.low %v3276_v12, %v3283_v9  ;;  %v3286_v13 = vcombine.low %v2140_v63, %v2147_v16  ;;  %v2749_v38 = vrot.slane %v2741_v15, %v4740_v28  ;;  %v2756_v39 = vrot.slane %v2742_v29, %v4740_v28 }
  0xfd   : > { %v5105_v52 = vpop.xlane.xlu0 %395  ;;  %3519 = vperm.xlu1 %4316, %v2978_v1   ;;  %v2443_v51 = vrot.slane %v5026_v6, %v4740_v28  ;;  %v2452_v2 = vcombine.low %v754_v40, %v761_v10  ;;  %v2453_v21 = vcombine.low %v768_v32, %v775_v56  ;;  %v5117_v31 = vcombine.low %v1650_v0, %v1657_v7 }
  0xfe   : > { %3573 = vperm.xlu0 %4315, %v3284_v45   ;;  %v2450_v35 = vrot.slane %v5039_v33, %v4740_v28  ;;  %v5123_v18 = vcombine.low %v1664_v8, %v1671_v34  ;;  %v2758_v14 = vcombine.low %v1258_v22, %v1265_v26  ;;  %v782_v24 = vrot.slane %v5037_v27, %v4720_v59 }
  0xff   : > { %v2757_v55 = vcombine.low %v2749_v38, %v2756_v39  ;;  %v2759_v4 = vcombine.low %v1272_v50, %v1279_v20  ;;  %v789_v6 = vrot.slane %v5037_v27, %v4723_v60  ;;  %v796_v37 = vrot.slane %v5037_v27, %v4726_v61 }
 0x100   : > { %v351_v36 = vpop.xlane.xlu1 %350  ;;  %v2451_v15 = vcombine.low %v2443_v51, %v2450_v35  ;;  %v2154_v33 = vrot.slane %v5103_v46, %v4720_v59  ;;  %v2161_v17 = vrot.slane %v5103_v46, %v4723_v60  ;;  %v3293_v23 = vrot.slane %v3285_v44, %v4740_v28 }
 0x101   : > { %v5121_v19 = vpop.xlane.xlu0 %302  ;;  %v3300_v29 = vrot.slane %v3286_v13, %v4740_v28  ;;  %v803_v40 = vrot.slane %v5037_v27, %v4729_v3  ;;  %v2987_v10 = vrot.slane %v5069_v5, %v4740_v28  ;;  %v2994_v54 = vrot.slane %v5073_v11, %v4740_v28 }
 0x102   : > { %3480 = vperm.xlu0 %4315, %v2757_v55   ;;  %3426 = vperm.xlu1 %4316, %v2451_v15   ;;  %v5146_v56 = vand.u32 127, %v527_v25  ;;  %v2168_v57 = vrot.slane %v5103_v46, %v4726_v61  ;;  %v2175_v27 = vrot.slane %v5103_v46, %v4729_v3  ;;  %v1678_v58 = vrot.slane %v5059_v49, %v4720_v59 }
 0x103   : > { %v3301_v42 = vcombine.low %v3293_v23, %v3300_v29  ;;  %v1685_v5 = vrot.slane %v5059_v49, %v4723_v60  ;;  %v1692_v11 = vrot.slane %v5059_v49, %v4726_v61  ;;  %v1699_v25 = vrot.slane %v5059_v49, %v4729_v3 }
 0x104   : > { %v447_v41 = vpop.xlane.xlu1 %446  ;;  %v2995_v30 = vcombine.low %v2987_v10, %v2994_v54  ;;  %v3302_v48 = vcombine.low %v2154_v33, %v2161_v17  ;;  %v1286_v62 = vrot.slane %v351_v36, %v4720_v59  ;;  %v1293_v63 = vrot.slane %v351_v36, %v4723_v60 }
 0x105   : > { %v5143_v32 = vpop.xlane.xlu0 %398  ;;  %v1300_v16 = vrot.slane %v351_v36, %v4726_v61  ;;  %v1307_v0 = vrot.slane %v351_v36, %v4729_v3  ;;  %v2766_v53 = vrot.slane %v2758_v14, %v4740_v28  ;;  %v2773_v7 = vrot.slane %v2759_v4, %v4740_v28 }
 0x106   : > { %3576 = vperm.xlu0 %4315, %v3301_v42   ;;  %3522 = vperm.xlu1 %4316, %v2995_v30   ;;  %v5171_v49 = vadd.s32 4294967288, %v5146_v56  ;;  %v2469_v9 = vcombine.low %v782_v24, %v789_v6  ;;  %v3303_v46 = vcombine.low %v2168_v57, %v2175_v27  ;;  %v2460_v34 = vrot.slane %v2452_v2, %v4740_v28 }
 0x107   : > { %v2467_v1 = vrot.slane %v2453_v21, %v4740_v28  ;;  %v2470_v22 = vcombine.low %v796_v37, %v803_v40  ;;  %v5175_v26 = vcombine.low %v1678_v58, %v1685_v5  ;;  %v5177_v44 = vcombine.low %v1692_v11, %v1699_v25 }
 0x108   : > { %v5166_v8 = vpop.xlane.xlu1 %353  ;;  %v2774_v45 = vcombine.low %v2766_v53, %v2773_v7  ;;  %v2775_v50 = vcombine.low %v1286_v62, %v1293_v63  ;;  %v810_v20 = vrot.slane %v5081_v47, %v4720_v59  ;;  %v817_v13 = vrot.slane %v5081_v47, %v4723_v60 }
 0x109   : > { %v5168_v12 = vpop.xlane.xlu0 %305  ;;  %v2468_v38 = vcombine.low %v2460_v34, %v2467_v1  ;;  %v2776_v39 = vcombine.low %v1300_v16, %v1307_v0  ;;  %v2182_v51 = vrot.slane %v447_v41, %v4720_v59  ;;  %v2189_v2 = vrot.slane %v447_v41, %v4723_v60 }
 0x10a   : > { %3483 = vperm.xlu0 %4315, %v2774_v45   ;;  %v3310_v21 = vrot.slane %v3302_v48, %v4740_v28  ;;  %v2196_v36 = vrot.slane %v447_v41, %v4726_v61  ;;  %v2203_v14 = vrot.slane %v447_v41, %v4729_v3  ;;  %v3317_v24 = vrot.slane %v3303_v46, %v4740_v28 }
 0x10b   : > { %3429 = vperm.xlu1 %4316, %v2468_v38   ;;  %v3004_v55 = vrot.slane %v5117_v31, %v4740_v28  ;;  %v824_v4 = vrot.slane %v5081_v47, %v4726_v61  ;;  %v831_v6 = vrot.slane %v5081_v47, %v4729_v3  ;;  %v1706_v37 = vrot.slane %v5105_v52, %v4720_v59 }
 0x10c   : > { %v5186_v35 = vpop.xlane.xlu1 %449  ;;  %v3011_v15 = vrot.slane %v5123_v18, %v4740_v28  ;;  %v1713_v17 = vrot.slane %v5105_v52, %v4723_v60  ;;  %v1720_v31 = vrot.slane %v5105_v52, %v4726_v61  ;;  %v1727_v23 = vrot.slane %v5105_v52, %v4729_v3 }
 0x10d   : > { %v5201_v33 = vpop.xlane.xlu0 %401  ;;  %v3318_v29 = vcombine.low %v3310_v21, %v3317_v24  ;;  %v5209_v40 = vcombine.low %v810_v20, %v817_v13  ;;  %v1314_v10 = vrot.slane %v5166_v8, %v4720_v59  ;;  %v1321_v18 = vrot.slane %v5166_v8, %v4723_v60 }
 0x10e   : > { %v3012_v47 = vcombine.low %v3004_v55, %v3011_v15  ;;  %v3319_v41 = vcombine.low %v2182_v51, %v2189_v2  ;;  %v3320_v57 = vcombine.low %v2196_v36, %v2203_v14  ;;  %v2783_v27 = vrot.slane %v2775_v50, %v4740_v28 }
 0x10f   : > { %3579 = vperm.xlu0 %4315, %v3318_v29   ;;  %v2790_v58 = vrot.slane %v2776_v39, %v4740_v28  ;;  %v1328_v52 = vrot.slane %v5166_v8, %v4726_v61  ;;  %v1335_v42 = vrot.slane %v5166_v8, %v4729_v3  ;;  %v2477_v5 = vrot.slane %v2469_v9, %v4740_v28 }
 0x110   : > { %v5215_v54 = vpop.xlane.xlu1 %356  ;;  %3525 = vperm.xlu1 %4316, %v3012_v47   ;;  %v2484_v11 = vrot.slane %v2470_v22, %v4740_v28  ;;  %v2487_v25 = vcombine.low %v824_v4, %v831_v6  ;;  %v5225_v30 = vcombine.low %v1706_v37, %v1713_v17  ;;  %v5227_v48 = vcombine.low %v1720_v31, %v1727_v23 }
 0x111   : > { %v2791_v62 = vcombine.low %v2783_v27, %v2790_v58  ;;  %v2792_v63 = vcombine.low %v1314_v10, %v1321_v18  ;;  %v838_v16 = vrot.slane %v5121_v19, %v4720_v59  ;;  %v845_v0 = vrot.slane %v5121_v19, %v4723_v60  ;;  %v5235_v8 = vpop.xlane.xlu0 %308 }
 0x112   : > { %v2485_v53 = vcombine.low %v2477_v5, %v2484_v11  ;;  %v852_v9 = vrot.slane %v5121_v19, %v4726_v61  ;;  %v2210_v46 = vrot.slane %v5186_v35, %v4720_v59  ;;  %v2217_v34 = vrot.slane %v5186_v35, %v4723_v60 }
 0x113   : > { %3486 = vperm.xlu0 %4315, %v2791_v62   ;;  %v3327_v1 = vrot.slane %v3319_v41, %v4740_v28  ;;  %v2793_v22 = vcombine.low %v1328_v52, %v1335_v42  ;;  %v859_v45 = vrot.slane %v5121_v19, %v4729_v3  ;;  %v3334_v50 = vrot.slane %v3320_v57, %v4740_v28 }
 0x114   : > { %v5233_v7 = vpop.xlane.xlu1 %452  ;;  %3432 = vperm.xlu1 %4316, %v2485_v53   ;;  %v3021_v20 = vrot.slane %v5175_v26, %v4740_v28  ;;  %v2224_v13 = vrot.slane %v5186_v35, %v4726_v61  ;;  %v2231_v38 = vrot.slane %v5186_v35, %v4729_v3  ;;  %v1734_v39 = vrot.slane %v5143_v32, %v4720_v59 }
 0x115   : > { %v3028_v51 = vrot.slane %v5177_v44, %v4740_v28  ;;  %v1741_v19 = vrot.slane %v5143_v32, %v4723_v60  ;;  %v1748_v2 = vrot.slane %v5143_v32, %v4726_v61  ;;  %v1755_v26 = vrot.slane %v5143_v32, %v4729_v3  ;;  %v5275_v37 = vpop.xlane.xlu0 %404 }
 0x116   : > { %v3335_v21 = vcombine.low %v3327_v1, %v3334_v50  ;;  %v3336_v36 = vcombine.low %v2210_v46, %v2217_v34  ;;  %v1342_v35 = vrot.slane %v5215_v54, %v4720_v59  ;;  %v1349_v24 = vrot.slane %v5215_v54, %v4723_v60 }
 0x117   : > { %v3029_v14 = vcombine.low %v3021_v20, %v3028_v51  ;;  %v1356_v44 = vrot.slane %v5215_v54, %v4726_v61  ;;  %v1363_v4 = vrot.slane %v5215_v54, %v4729_v3  ;;  %v2800_v32 = vrot.slane %v2792_v63, %v4740_v28 }
 0x118   : > { %v5267_v55 = vpop.xlane.xlu1 %359  ;;  %3582 = vperm.xlu0 %4315, %v3335_v21   ;;  %v2807_v6 = vrot.slane %v2793_v22, %v4740_v28  ;;  %v2503_v15 = vcombine.low %v838_v16, %v845_v0  ;;  %v3337_v17 = vcombine.low %v2224_v13, %v2231_v38  ;;  %v2494_v31 = vrot.slane %v5209_v40, %v4740_v28 }
 0x119   : > { %3528 = vperm.xlu1 %4316, %v3029_v14   ;;  %v2501_v23 = vrot.slane %v2487_v25, %v4740_v28  ;;  %v2504_v29 = vcombine.low %v852_v9, %v859_v45  ;;  %v5280_v47 = vcombine.low %v1734_v39, %v1741_v19  ;;  %v5282_v10 = vcombine.low %v1748_v2, %v1755_v26 }
 0x11a   : > { %v2808_v18 = vcombine.low %v2800_v32, %v2807_v6  ;;  %v2809_v54 = vcombine.low %v1342_v35, %v1349_v24  ;;  %v866_v41 = vrot.slane %v5168_v12, %v4720_v59  ;;  %v873_v57 = vrot.slane %v5168_v12, %v4723_v60 }
 0x11b   : > { %v2502_v27 = vcombine.low %v2494_v31, %v2501_v23  ;;  %v2810_v58 = vcombine.low %v1356_v44, %v1363_v4  ;;  %v2238_v40 = vrot.slane %v5233_v7, %v4720_v59  ;;  %v2245_v52 = vrot.slane %v5233_v7, %v4723_v60 }
 0x11c   : > { %3489 = vperm.xlu0 %4315, %v2808_v18   ;;  %v3344_v42 = vrot.slane %v3336_v36, %v4740_v28  ;;  %v2252_v5 = vrot.slane %v5233_v7, %v4726_v61  ;;  %v2259_v11 = vrot.slane %v5233_v7, %v4729_v3  ;;  %v3351_v25 = vrot.slane %v3337_v17, %v4740_v28  ;;  %v5300_v63 = vpop.xlane.xlu1 %455  ;;  %v5310_v7 = vpop.xlane.xlu0 %311 }
 0x11d   : > { %3435 = vperm.xlu1 %4316, %v2502_v27   ;;  %v3038_v62 = vrot.slane %v5225_v30, %v4740_v28  ;;  %v880_v16 = vrot.slane %v5168_v12, %v4726_v61  ;;  %v887_v0 = vrot.slane %v5168_v12, %v4729_v3  ;;  %v1762_v53 = vrot.slane %v5201_v33, %v4720_v59 }
 0x11e   : > { %v3045_v9 = vrot.slane %v5227_v48, %v4740_v28  ;;  %v1769_v46 = vrot.slane %v5201_v33, %v4723_v60  ;;  %v1776_v30 = vrot.slane %v5201_v33, %v4726_v61  ;;  %v1783_v34 = vrot.slane %v5201_v33, %v4729_v3 }
 0x11f   : > { %v3352_v1 = vcombine.low %v3344_v42, %v3351_v25  ;;  %v5318_v22 = vcombine.low %v866_v41, %v873_v57  ;;  %v1370_v45 = vrot.slane %v5267_v55, %v4720_v59  ;;  %v1377_v48 = vrot.slane %v5267_v55, %v4723_v60 }
 0x120   : > { %v3046_v12 = vcombine.low %v3038_v62, %v3045_v9  ;;  %v3353_v50 = vcombine.low %v2238_v40, %v2245_v52  ;;  %v3354_v20 = vcombine.low %v2252_v5, %v2259_v11  ;;  %v2817_v13 = vrot.slane %v2809_v54, %v4740_v28  ;;  %v363_v14 = vpop.xlane.xlu1 %362 }
 0x121   : > { %3585 = vperm.xlu0 %4315, %v3352_v1   ;;  %v2824_v38 = vrot.slane %v2810_v58, %v4740_v28  ;;  %v1384_v33 = vrot.slane %v5267_v55, %v4726_v61  ;;  %v1391_v39 = vrot.slane %v5267_v55, %v4729_v3  ;;  %v2511_v51 = vrot.slane %v2503_v15, %v4740_v28  ;;  %v5340_v55 = vpop.xlane.xlu0 %407 }
 0x122   : > { %3531 = vperm.xlu1 %4316, %v3046_v12   ;;  %v2518_v19 = vrot.slane %v2504_v29, %v4740_v28  ;;  %v2521_v2 = vcombine.low %v880_v16, %v887_v0  ;;  %v5332_v26 = vcombine.low %v1762_v53, %v1769_v46  ;;  %v5334_v21 = vcombine.low %v1776_v30, %v1783_v34 }
 0x123   : > { %v2825_v36 = vcombine.low %v2817_v13, %v2824_v38  ;;  %v2826_v35 = vcombine.low %v1370_v45, %v1377_v48  ;;  %v894_v24 = vrot.slane %v5235_v8, %v4720_v59  ;;  %v901_v44 = vrot.slane %v5235_v8, %v4723_v60 }
 0x124   : > { %v2519_v4 = vcombine.low %v2511_v51, %v2518_v19  ;;  %v908_v32 = vrot.slane %v5235_v8, %v4726_v61  ;;  %v2266_v6 = vrot.slane %v5300_v63, %v4720_v59  ;;  %v2273_v15 = vrot.slane %v5300_v63, %v4723_v60  ;;  %v459_v25 = vpop.xlane.xlu1 %458 }
 0x125   : > { %3492 = vperm.xlu0 %4315, %v2825_v36   ;;  %v3361_v17 = vrot.slane %v3353_v50, %v4740_v28  ;;  %v2827_v31 = vcombine.low %v1384_v33, %v1391_v39  ;;  %v915_v23 = vrot.slane %v5235_v8, %v4729_v3  ;;  %v3368_v29 = vrot.slane %v3354_v20, %v4740_v28  ;;  %v5374_v0 = vpop.xlane.xlu0 %314 }
 0x126   : > { %3438 = vperm.xlu1 %4316, %v2519_v4   ;;  %v3055_v18 = vrot.slane %v5280_v47, %v4740_v28  ;;  %v2280_v54 = vrot.slane %v5300_v63, %v4726_v61  ;;  %v2287_v41 = vrot.slane %v5300_v63, %v4729_v3  ;;  %v1790_v57 = vrot.slane %v5275_v37, %v4720_v59 }
 0x127   : > { %v3062_v27 = vrot.slane %v5282_v10, %v4740_v28  ;;  %v1797_v8 = vrot.slane %v5275_v37, %v4723_v60  ;;  %v3369_v58 = vcombine.low %v3361_v17, %v3368_v29  ;;  %v1398_v40 = vrot.slane %v363_v14, %v4720_v59 }
 0x128   : > { %v1405_v47 = vrot.slane %v363_v14, %v4723_v60  ;;  %v3370_v52 = vcombine.low %v2266_v6, %v2273_v15  ;;  %v1804_v42 = vrot.slane %v5275_v37, %v4726_v61  ;;  %v1811_v5 = vrot.slane %v5275_v37, %v4729_v3 }
 0x129   : > { %v3063_v11 = vcombine.low %v3055_v18, %v3062_v27  ;;  %3588 = vperm.xlu0 %4315, %v3369_v58   ;;  %v1412_v10 = vrot.slane %v363_v14, %v4726_v61  ;;  %v1419_v62 = vrot.slane %v363_v14, %v4729_v3  ;;  %v2834_v63 = vrot.slane %v2826_v35, %v4740_v28 }
 0x12a   : > { %v2841_v16 = vrot.slane %v2827_v31, %v4740_v28  ;;  %v3371_v53 = vcombine.low %v2280_v54, %v2287_v41  ;;  %v922_v9 = vrot.slane %v5310_v7, %v4720_v59  ;;  %v2528_v37 = vrot.slane %v5318_v22, %v4740_v28 }
 0x12b   : > { %3534 = vperm.xlu1 %4316, %v3063_v11   ;;  %v2535_v46 = vrot.slane %v2521_v2, %v4740_v28  ;;  %v2843_v30 = vcombine.low %v1398_v40, %v1405_v47  ;;  %v2294_v1 = vrot.slane %v459_v25, %v4720_v59  ;;  %v2301_v12 = vrot.slane %v459_v25, %v4723_v60 }
 0x12c   : > { %v2842_v34 = vcombine.low %v2834_v63, %v2841_v16  ;;  %v929_v45 = vrot.slane %v5310_v7, %v4723_v60  ;;  %v2308_v50 = vrot.slane %v459_v25, %v4726_v61  ;;  %v2315_v20 = vrot.slane %v459_v25, %v4729_v3 }
 0x12d   : > { %v2536_v48 = vcombine.low %v2528_v37, %v2535_v46  ;;  %v2537_v13 = vcombine.low %v894_v24, %v901_v44  ;;  %v2538_v38 = vcombine.low %v908_v32, %v915_v23  ;;  %v2844_v33 = vcombine.low %v1412_v10, %v1419_v62  ;;  %v411_v44 = vpop.xlane.xlu0 %410 }
 0x12e   : > { %3495 = vperm.xlu0 %4315, %v2842_v34   ;;  %v3378_v22 = vrot.slane %v3370_v52, %v4740_v28  ;;  %v3081_v39 = vcombine.low %v1790_v57, %v1797_v8  ;;  %v3082_v51 = vcombine.low %v1804_v42, %v1811_v5  ;;  %v3385_v19 = vrot.slane %v3371_v53, %v4740_v28 }
 0x12f   : > { %3441 = vperm.xlu1 %4316, %v2536_v48   ;;  %v3072_v2 = vrot.slane %v5332_v26, %v4740_v28  ;;  %v936_v36 = vrot.slane %v5310_v7, %v4726_v61  ;;  %v943_v14 = vrot.slane %v5310_v7, %v4729_v3  ;;  %v3387_v35 = vcombine.low %v2294_v1, %v2301_v12 }
 0x130   : > { %v3079_v24 = vrot.slane %v5334_v21, %v4740_v28  ;;  %v2554_v4 = vcombine.low %v922_v9, %v929_v45  ;;  %v3388_v32 = vcombine.low %v2308_v50, %v2315_v20  ;;  %v3386_v6 = vcombine.low %v3378_v22, %v3385_v19 }
 0x131   : > { %v2851_v15 = vrot.slane %v2843_v30, %v4740_v28  ;;  %v1818_v26 = vrot.slane %v5340_v55, %v4720_v59  ;;  %v2858_v31 = vrot.slane %v2844_v33, %v4740_v28  ;;  %v2545_v23 = vrot.slane %v2537_v13, %v4740_v28 }
 0x132   : > { %v3080_v17 = vcombine.low %v3072_v2, %v3079_v24  ;;  %v1825_v7 = vrot.slane %v5340_v55, %v4723_v60  ;;  %v1832_v21 = vrot.slane %v5340_v55, %v4726_v61  ;;  %v1839_v29 = vrot.slane %v5340_v55, %v4729_v3  ;;  %3591 = vperm.xlu0 %4315, %v3386_v6   ;;  %v3406_v25 = vpop.permute.xlu0 %3405 }
 0x133   : > { %v2552_v18 = vrot.slane %v2538_v38, %v4740_v28  ;;  %v2555_v41 = vcombine.low %v936_v36, %v943_v14  ;;  %v950_v57 = vrot.slane %v5374_v0, %v4720_v59  ;;  %v2859_v27 = vcombine.low %v2851_v15, %v2858_v31  ;;  %v3979_v31 = vld [vmem:[%s5881_s1 + $0x88] sm:$0xff] }
 0x134   : > { %3537 = vperm.xlu1 %4316, %v3080_v17   ;;  %v3395_v8 = vrot.slane %v3387_v35, %v4740_v28  ;;  %v957_v58 = vrot.slane %v5374_v0, %v4723_v60  ;;  %v3402_v47 = vrot.slane %v3388_v32, %v4740_v28  ;;  %v3089_v55 = vrot.slane %v3081_v39, %v4740_v28  ;;  %v3978_v17 = vld [vmem:[%s5881_s1 + $0x80] sm:$0xff] }
 0x135   : > { %v3409_v54 = vpop.permute.xlu1 %3408  ;;  %v2553_v40 = vcombine.low %v2545_v23, %v2552_v18  ;;  %v964_v52 = vrot.slane %v5374_v0, %v4726_v61  ;;  %v971_v42 = vrot.slane %v5374_v0, %v4729_v3  ;;  %v3096_v5 = vrot.slane %v3082_v51, %v4740_v28  ;;  %v3962_v23 = vld [vmem:[%s5881_s1] sm:$0xff] }
 0x136   : > { %v5423_v11 = vsub.s32 %v5146_v56, %v4717_v43  ;;  %v3098_v10 = vcombine.low %v1818_v26, %v1825_v7  ;;  %v3099_v62 = vcombine.low %v1832_v21, %v1839_v29  ;;  %3498 = vperm.xlu0 %4315, %v2859_v27   ;;  %v3403_v63 = vcombine.low %v3395_v8, %v3402_v47 }
 0x137   : > { %v5427_v16 = vsub.s32 %v5171_v49, %v4717_v43  ;;  %v3097_v9 = vcombine.low %v3089_v55, %v3096_v5  ;;  %v2562_v0 = vrot.slane %v2554_v4, %v4740_v28  ;;  %v2569_v37 = vrot.slane %v2555_v41, %v4740_v28  ;;  %v3980_v41 = vld [vmem:[%s5881_s1 + $0x90] sm:$0xff]  ;;  %v3982_v5 = vld [vmem:[%s5881_s1 + $0xa0] sm:$0xff] }
 0x138   : > { %3444 = vperm.xlu1 %4316, %v2553_v40   ;;  %v3609_v46 = vadd.s32 4294967280, %v5146_v56  ;;  %v2571_v30 = vcombine.low %v950_v57, %v957_v58  ;;  %v3601_v34 = vrot.slane %v3406_v25, %v5423_v11  ;;  %v2572_v12 = vcombine.low %v964_v52, %v971_v42  ;;  %v3981_v57 = vld [vmem:[%s5881_s1 + $0x98] sm:$0xff]  ;;  %v3964_v58 = vld [vmem:[%s5881_s1 + $0x10] sm:$0xff]  ;;  %v3983_v25 = vld [vmem:[%s5881_s1 + $0xa8] sm:$0xff] }
 0x139   : > { %v3454_v53 = vpop.permute.xlu1 %3453  ;;  %v3606_v1 = vrot.slane %v3409_v54, %v5427_v16  ;;  %v1846_v45 = vrot.slane %v411_v44, %v4720_v59  ;;  %v1853_v49 = vrot.slane %v411_v44, %v4723_v60  ;;  %v1860_v48 = vrot.slane %v411_v44, %v4726_v61  ;;  %v3963_v54 = vld [vmem:[%s5881_s1 + $0x8] sm:$0xff]  ;;  %v3965_v40 = vld [vmem:[%s5881_s1 + $0x18] sm:$0xff] }
 0x13a   : > { %v1867_v50 = vrot.slane %v411_v44, %v4729_v3  ;;  %3594 = vperm.xlu0 %4315, %v3403_v63   ;;  %v3106_v13 = vrot.slane %v3098_v10, %v4740_v28  ;;  %v3113_v38 = vrot.slane %v3099_v62, %v4740_v28  ;;  %v2570_v22 = vcombine.low %v2562_v0, %v2569_v37  ;;  %v3966_v37 = vld [vmem:[%s5881_s1 + $0x20] sm:$0xff] }
 0x13b   : > { %v5439_v20 = vsel %vm3607_vm1, %v3606_v1, %v3601_v34  ;;  %v3710_v39 = vrot.slane %v3454_v53, %v5423_v11  ;;  %v5446_v60 = vsub.s32 %v3609_v46, %v4717_v43  ;;  %v3115_v3 = vcombine.low %v1846_v45, %v1853_v49  ;;  %v3967_v46 = vld [vmem:[%s5881_s1 + $0x28] sm:$0xff]  ;;  %v3984_v45 = vld [vmem:[%s5881_s1 + $0xb0] sm:$0xff]  ;;  %v3985_v49 = vld [vmem:[%s5881_s1 + $0xb8] sm:$0xff] }
 0x13c   : > { %3540 = vperm.xlu1 %4316, %v3097_v9   ;;  %v3116_v51 = vcombine.low %v1860_v48, %v1867_v50  ;;  %v3616_v36 = vadd.s32 4294967272, %v5146_v56  ;;  %v3114_v14 = vcombine.low %v3106_v13, %v3113_v38  ;;  %v2579_v35 = vrot.slane %v2571_v30, %v4740_v28 }
 0x13d   : > { %v3457_v33 = vpop.permute.xlu1 %3456  ;;  %v2586_v24 = vrot.slane %v2572_v12, %v4740_v28  ;;  %v3123_v32 = vrot.slane %v3115_v3, %v4740_v28  ;;  %v4221_v8 = vpack.c.bf16 %v3979_v31, %v3978_v17  ;;  %v4223_v52 = vpack.c.bf16 %v3963_v54, %v3962_v23  ;;  %v3988_v17 = vld [vmem:[%s5881_s1 + $0xd0] sm:$0xff] }
 0x13e   : > { %v3714_v59 = vrot.slane %v3457_v33, %v5427_v16  ;;  %v3130_v6 = vrot.slane %v3116_v51, %v4740_v28  ;;  %v5468_v18 = vsub.s32 %v3616_v36, %v4717_v43  ;;  %v4225_v42 = vpack.c.bf16 %v3981_v57, %v3980_v41  ;;  %v3986_v51 = vld [vmem:[%s5881_s1 + $0xc0] sm:$0xff]  ;;  %v3972_v54 = vld [vmem:[%s5881_s1 + $0x50] sm:$0xff]  ;;  %v3973_v41 = vld [vmem:[%s5881_s1 + $0x58] sm:$0xff] }
 0x13f   : > { %v2587_v7 = vcombine.low %v2579_v35, %v2586_v24  ;;  %v3623_v63 = vadd.s32 4294967264, %v5146_v56  ;;  %4222 = vmatprep.subr.bf16.mxu0 %v4221_v8  ;;  %v4227_v53 = vpack.c.bf16 %v3965_v40, %v3964_v58  ;;  %v4229_v0 = vpack.c.bf16 %v3983_v25, %v3982_v5  ;;  %v3990_v8 = vld [vmem:[%s5881_s1 + $0xe0] sm:$0xff]  ;;  %v3991_v58 = vld [vmem:[%s5881_s1 + $0xe8] sm:$0xff] }
 0x140   : > { %v3715_v61 = vsel %vm3607_vm1, %v3714_v59, %v3710_v39  ;;  %3447 = vperm.xlu1 %4316, %v2570_v22   ;;  %v3131_v10 = vcombine.low %v3123_v32, %v3130_v6  ;;  %4224 = vmatpush3.bf16.msra.mxu0 %v4223_v52  ;;  %v4403_v12 = vmov 0.0   ;;  %v4231_v38 = vpack.c.bf16 %v3967_v46, %v3966_v37  ;;  %v3968_v59 = vld [vmem:[%s5881_s1 + $0x30] sm:$0xff]  ;;  %v3970_v6 = vld [vmem:[%s5881_s1 + $0x40] sm:$0xff] }
 0x141   : > { %v3502_v19 = vpop.permute.xlu1 %3501  ;;  %v3460_v2 = vpop.permute.xlu0 %3459  ;;  %4226 = vmatprep.subr.bf16.mxu0 %v4225_v42  ;;  %201 = vst [vmem:[#allocation2] sm:$0xf] %v4403_v12  ;;  %v5513_v13 = vsub.s32 %v3623_v63, %v4717_v43  ;;  %v4233_v39 = vpack.c.bf16 %v3985_v49, %v3984_v45  ;;  %v4245_v5 = vpack.c.bf16 %v3991_v58, %v3990_v8  ;;  %v3974_v25 = vld [vmem:[%s5881_s1 + $0x60] sm:$0xff]  ;;  %v3977_v12 = vld [vmem:[%s5881_s1 + $0x78] sm:$0xff] }
 0x142   : > { %v3719_v44 = vrot.slane %v3460_v2, %v5446_v60  ;;  %v3789_v21 = vrot.slane %v3502_v19, %v5423_v11  ;;  %v3987_v19 = vld [vmem:[%s5881_s1 + $0xc8] sm:$0xff] }
 0x143   : > { %v4237_v32 = vpack.c.bf16 %v3987_v19, %v3986_v51 }
 0x144   : > { %v3720_v4 = vsel %vm3614_vm2, %v3719_v44, %v3715_v61  ;;  %3543 = vperm.xlu1 %4316, %v3114_v14   ;;  %4228 = vmatpush3.bf16.msra.mxu0 %v4227_v53 }
 0x145   : > { %v3505_v15 = vpop.permute.xlu1 %3504  ;;  %v3556_v26 = vpop.permute.xlu0 %3555  ;;  %4230 = vmatprep.subr.bf16.mxu0 %v4229_v0 }
 0x146   : > { %v3793_v29 = vrot.slane %v3505_v15, %v5427_v16  ;;  %v3877_v30 = vrot.slane %v3556_v26, %v5446_v60  ;;  %v3971_v15 = vld [vmem:[%s5881_s1 + $0x48] sm:$0xff] }
 0x147   : > { %v4239_v23 = vpack.c.bf16 %v3971_v15, %v3970_v6 }
 0x148   : > { %v5480_v27 = vsel %vm3607_vm1, %v3793_v29, %v3789_v21  ;;  %3450 = vperm.xlu1 %4316, %v2587_v7   ;;  %4232 = vmatpush3.bf16.msra.mxu0 %v4231_v38 }
 0x149   : > { %v3550_v47 = vpop.permute.xlu1 %3549  ;;  %v3463_v55 = vpop.permute.xlu0 %3462  ;;  %4234 = vmatprep.subr.bf16.mxu0 %v4233_v39 }
 0x14a   : > { %v3724_v62 = vrot.slane %v3463_v55, %v5468_v18  ;;  %v3868_v48 = vrot.slane %v3550_v47, %v5423_v11  ;;  %v3969_v11 = vld [vmem:[%s5881_s1 + $0x38] sm:$0xff]  ;;  %v4243_v55 = vpack.c.bf16 %v3973_v41, %v3972_v54 }
 0x14b   : > { %v4235_v35 = vpack.c.bf16 %v3969_v11, %v3968_v59 }
 0x14c   : > { %v3725_v9 = vsel %vm3621_vm3, %v3724_v62, %v3720_v4  ;;  %3546 = vperm.xlu1 %4316, %v3131_v10   ;;  %v3630_v4 = vadd.s32 4294967256, %v5146_v56  ;;  %v3975_v10 = vld [vmem:[%s5881_s1 + $0x68] sm:$0xff]  ;;  %v3992_v62 = vld [vmem:[%s5881_s1 + $0xf0] sm:$0xff] }
 0x14d   : > { %v3553_v34 = vpop.permute.xlu1 %3552  ;;  %v3559_v1 = vpop.permute.xlu0 %3558  ;;  %4236 = vmatpush3.bf16.msra.mxu0 %v4235_v35  ;;  %v4247_v37 = vpack.c.bf16 %v3975_v10, %v3974_v25 }
 0x14e   : > { %v3872_v50 = vrot.slane %v3553_v34, %v5427_v16  ;;  %v3882_v22 = vrot.slane %v3559_v1, %v5468_v18  ;;  %v5552_v21 = vsub.s32 %v3630_v4, %v4717_v43  ;;  %4238 = vmatprep.subr.bf16.mxu0 %v4237_v32  ;;  %v3976_v1 = vld [vmem:[%s5881_s1 + $0x70] sm:$0xff] }
 0x14f   : > { %v4251_v38 = vpack.c.bf16 %v3977_v12, %v3976_v1 }
 0x150   : > { %v3873_v33 = vsel %vm3607_vm1, %v3872_v50, %v3868_v48 }
 0x151   : > { %v3878_v16 = vsel %vm3614_vm2, %v3877_v30, %v3873_v33  ;;  %v3412_v61 = vpop.permute.xlu1 %3411  ;;  %v3466_v3 = vpop.permute.xlu0 %3465  ;;  %4240 = vmatpush3.bf16.msra.mxu0 %v4239_v23 }
 0x152   : > { %v3883_v2 = vsel %vm3621_vm3, %v3882_v22, %v3878_v16  ;;  %v3613_v36 = vrot.slane %v3412_v61, %v5446_v60  ;;  %v3729_v14 = vrot.slane %v3466_v3, %v5513_v13 }
 0x154   : > { %v3615_v24 = vsel %vm3614_vm2, %v3613_v36, %v5439_v20  ;;  %v3730_v44 = vsel %vm3628_vm4, %v3729_v14, %v3725_v9  ;;  %v3989_v20 = vld [vmem:[%s5881_s1 + $0xd8] sm:$0xff]  ;;  %v3637_v9 = vadd.s32 4294967248, %v5146_v56 }
 0x155   : > { %v3562_v26 = vpop.permute.xlu0 %3561  ;;  %v4241_v29 = vpack.c.bf16 %v3989_v20, %v3988_v17  ;;  %v3508_v57 = vpop.permute.xlu1 %3507 }
 0x156   : > { %v3887_v31 = vrot.slane %v3562_v26, %v5513_v13  ;;  %v3798_v40 = vrot.slane %v3508_v57, %v5446_v60  ;;  %v5598_v50 = vsub.s32 %v3637_v9, %v4717_v43  ;;  %v3665_v9 = vadd.s32 4294967216, %v5146_v56 }
 0x157   : > { %4242 = vmatprep.subr.bf16.mxu0 %v4241_v29 }
 0x158   : > { %v3888_v7 = vsel %vm3628_vm4, %v3887_v31, %v3883_v2  ;;  %v3799_v52 = vsel %vm3614_vm2, %v3798_v40, %v5480_v27  ;;  %v3993_v27 = vld [vmem:[%s5881_s1 + $0xf8] sm:$0xff]  ;;  %4244 = vmatpush3.bf16.msra.mxu0 %v4243_v55 }
 0x159   : > { %v3469_v47 = vpop.permute.xlu0 %3468  ;;  %4246 = vmatprep.subr.bf16.mxu0 %v4245_v5  ;;  %v4249_v34 = vpack.c.bf16 %v3993_v27, %v3992_v62  ;;  %v3651_v27 = vadd.s32 4294967232, %v5146_v56 }
 0x15a   : > { %v3734_v42 = vrot.slane %v3469_v47, %v5552_v21 }
 0x15b   : > { %v3415_v60 = vpop.permute.xlu1 %3414 }
 0x15c   : > { %v3620_v63 = vrot.slane %v3415_v60, %v5468_v18  ;;  %v3735_v53 = vsel %vm3635_vm5, %v3734_v42, %v3730_v44  ;;  %4248 = vmatpush3.bf16.msra.mxu0 %v4247_v37  ;;  %v3644_v60 = vadd.s32 4294967240, %v5146_v56  ;;  %v3672_v37 = vadd.s32 4294967208, %v5146_v56 }
 0x15d   : > { %v3565_v0 = vpop.permute.xlu0 %3564  ;;  %4250 = vmatprep.subr.bf16.mxu0 %v4249_v34  ;;  %v3679_v34 = vadd.s32 4294967200, %v5146_v56 }
 0x15e   : > { %v3622_v46 = vsel %vm3621_vm3, %v3620_v63, %v3615_v24  ;;  %v3892_v30 = vrot.slane %v3565_v0, %v5552_v21  ;;  %v5676_v0 = vsub.s32 %v3644_v60, %v4717_v43 }
 0x15f   : > { %v3511_v45 = vpop.permute.xlu1 %3510 }
 0x160   : > { %v3803_v49 = vrot.slane %v3511_v45, %v5468_v18  ;;  %v5595_v48 = vsel %vm3635_vm5, %v3892_v30, %v3888_v7  ;;  %4252 = vmatpush3.bf16.msra.mxu0 %v4251_v38  ;;  %v5682_v30 = vsub.s32 %v3651_v27, %v4717_v43  ;;  %v3686_v45 = vadd.s32 4294967192, %v5146_v56 }
 0x162   : > { %v3804_v33 = vsel %vm3621_vm3, %v3803_v49, %v3799_v52  ;;  %v3472_v39 = vpop.permute.xlu0 %3471  ;;  %v3693_v49 = vadd.s32 4294967184, %v5146_v56 }
 0x163   : > { %v3418_v22 = vpop.permute.xlu1 %3417  ;;  %v3739_v11 = vrot.slane %v3472_v39, %v5598_v50 }
 0x164   : > { %v3627_v59 = vrot.slane %v3418_v22, %v5513_v13  ;;  %v3700_v22 = vadd.s32 4294967176, %v5146_v56 }
 0x165   : > { %v5605_v16 = vsel %vm3642_vm6, %v3739_v11, %v3735_v53  ;;  %v3658_v53 = vadd.s32 4294967224, %v5146_v56  ;;  %v5703_v11 = vsub.s32 %v3672_v37, %v4717_v43 }
 0x166   : > { %v3629_v18 = vsel %vm3628_vm4, %v3627_v59, %v3622_v46 }
 0x167   : > { %v5607_v61 = vpop.permute.xlu0 %3567  ;;  %v5688_v12 = vsub.s32 %v3658_v53, %v4717_v43 }
 0x168   : > { %v3897_v38 = vrot.slane %v5607_v61, %v5598_v50 }
 0x16a   : > { %v3514_v3 = vpop.permute.xlu1 %3513 }
 0x16b   : > { %v3808_v51 = vrot.slane %v3514_v3, %v5513_v13  ;;  %v5710_v3 = vsub.s32 %v3679_v34, %v4717_v43 }
 0x16d   : > { %v3809_v19 = vsel %vm3628_vm4, %v3808_v51, %v3804_v33  ;;  %v5611_v2 = vpop.permute.xlu0 %3474  ;;  %v5695_v33 = vsub.s32 %v3665_v9, %v4717_v43 }
 0x16e   : > { %v3744_v39 = vrot.slane %v5611_v2, %v5676_v0  ;;  %v5717_v2 = vsub.s32 %v3686_v45, %v4717_v43 }
 0x16f   : > { %v3421_v36 = vpop.permute.xlu1 %3420 }
 0x170   : > { %v3634_v14 = vrot.slane %v3421_v36, %v5552_v21  ;;  %v5720_v36 = vsub.s32 %v3693_v49, %v4717_v43 }
 0x172   : > { %v3636_v35 = vsel %vm3635_vm5, %v3634_v14, %v3629_v18  ;;  %v5615_v24 = vpop.permute.xlu0 %3570 }
 0x173   : > { %v3517_v44 = vpop.permute.xlu1 %3516  ;;  %v3902_v59 = vrot.slane %v5615_v24, %v5676_v0 }
 0x174   : > { %v3813_v4 = vrot.slane %v3517_v44, %v5552_v21 }
 0x176   : > { %v5619_v32 = vsel %vm3635_vm5, %v3813_v4, %v3809_v19  ;;  %v5731_v4 = vsub.s32 %v3700_v22, %v4717_v43 }
 0x177   : > { %v3424_v6 = vpop.permute.xlu1 %3423 }
 0x178   : > { %v3641_v13 = vrot.slane %v3424_v6, %v5598_v50  ;;  %v5622_v15 = vpop.permute.xlu0 %3477  ;;  %v3745_v6 = vsel %vm3649_vm7, %v3744_v39, %v5605_v16 }
 0x179   : > { %v3749_v18 = vrot.slane %v5622_v15, %v5682_v30 }
 0x17a   : > { %v5625_v26 = vsel %vm3642_vm6, %v3641_v13, %v3636_v35  ;;  %v3898_v35 = vsel %vm3642_vm6, %v3897_v38, %v5595_v48 }
 0x17b   : > { %v3903_v13 = vsel %vm3649_vm7, %v3902_v59, %v3898_v35 }
 0x17c   : > { %v5627_v17 = vpop.permute.xlu1 %3519 }
 0x17d   : > { %v5629_v20 = vpop.permute.xlu0 %3573 }
 0x17e   : > { %v3907_v61 = vrot.slane %v5629_v20, %v5682_v30  ;;  %v3750_v20 = vsel %vm3656_vm8, %v3749_v18, %v3745_v6 }
 0x181   : > { %v5631_v31 = vpop.permute.xlu1 %3426  ;;  %v5633_v23 = vpop.permute.xlu0 %3480 }
 0x182   : > { %v3754_v51 = vrot.slane %v5633_v23, %v5688_v12  ;;  %v3908_v23 = vsel %vm3656_vm8, %v3907_v61, %v3903_v13  ;;  %v3648_v35 = vrot.slane %v5631_v31, %v5676_v0 }
 0x184   : > { %v3755_v16 = vsel %vm3663_vm9, %v3754_v51, %v3750_v20 }
 0x185   : > { %v5635_v7 = vpop.permute.xlu1 %3522  ;;  %v5637_v21 = vpop.permute.xlu0 %3576 }
 0x186   : > { %v3912_v19 = vrot.slane %v5637_v21, %v5688_v12 }
 0x189   : > { %v5639_v29 = vpop.permute.xlu0 %3483 }
 0x18a   : > { %v5641_v54 = vpop.permute.xlu1 %3429  ;;  %v3759_v24 = vrot.slane %v5639_v29, %v5695_v33 }
 0x18c   : > { %v3760_v27 = vsel %vm3670_vm10, %v3759_v24, %v3755_v16  ;;  %v3823_v24 = vrot.slane %v5635_v7, %v5676_v0  ;;  %v3650_v7 = vsel %vm3649_vm7, %v3648_v35, %v5625_v26 }
 0x18e   : > { %v5643_v41 = vpop.permute.xlu0 %3579 }
 0x18f   : > { %v5645_v57 = vpop.permute.xlu1 %3525  ;;  %v3917_v44 = vrot.slane %v5643_v41, %v5695_v33  ;;  %v3913_v41 = vsel %vm3663_vm9, %v3912_v19, %v3908_v23  ;;  %v3818_v19 = vrot.slane %v5627_v17, %v5598_v50 }
 0x190   : > { %v3828_v6 = vrot.slane %v5645_v57, %v5682_v30 }
 0x191   : > { %v3918_v53 = vsel %vm3670_vm10, %v3917_v44, %v3913_v41  ;;  %v3655_v44 = vrot.slane %v5641_v54, %v5682_v30  ;;  %v3819_v50 = vsel %vm3642_vm6, %v3818_v19, %v5619_v32 }
 0x192   : > { %v5647_v8 = vpop.permute.xlu0 %3486  ;;  %v3824_v54 = vsel %vm3649_vm7, %v3823_v24, %v3819_v50 }
 0x193   : > { %v5649_v58 = vpop.permute.xlu1 %3432  ;;  %v3764_v15 = vrot.slane %v5647_v8, %v5703_v11  ;;  %v3829_v32 = vsel %vm3656_vm8, %v3828_v6, %v3824_v54 }
 0x195   : > { %v3765_v9 = vsel %vm3677_vm11, %v3764_v15, %v3760_v27  ;;  %v3662_v15 = vrot.slane %v5649_v58, %v5688_v12 }
 0x197   : > { %v5651_v40 = vpop.permute.xlu0 %3582 }
 0x198   : > { %v5653_v47 = vpop.permute.xlu1 %3528  ;;  %v3922_v48 = vrot.slane %v5651_v40, %v5703_v11 }
 0x19a   : > { %v3923_v37 = vsel %vm3677_vm11, %v3922_v48, %v3918_v53  ;;  %v3833_v48 = vrot.slane %v5653_v47, %v5688_v12  ;;  %v3657_v47 = vsel %vm3656_vm8, %v3655_v44, %v3650_v7  ;;  %v266_v53 = vld [vmem:[#allocation2] sm:$0xf] }
 0x19b   : > { %v5655_v55 = vpop.permute.xlu0 %3489  ;;  %v3664_v26 = vsel %vm3663_vm9, %v3662_v15, %v3657_v47 }
 0x19c   : > { %v5657_v52 = vpop.permute.xlu1 %3435  ;;  %v3769_v21 = vrot.slane %v5655_v55, %v5710_v3  ;;  %v3834_v30 = vsel %vm3663_vm9, %v3833_v48, %v3829_v32 }
 0x19d   : > { %v3669_v17 = vrot.slane %v5657_v52, %v5695_v33 }
 0x19e   : > { %v3770_v34 = vsel %vm3684_vm12, %v3769_v21, %v3765_v9 }
 0x1a0   : > { %v5659_v42 = vpop.permute.xlu0 %3585 }
 0x1a1   : > { %v5661_v5 = vpop.permute.xlu1 %3531  ;;  %v3927_v43 = vrot.slane %v5659_v42, %v5710_v3 }
 0x1a2   : > { %v3838_v31 = vrot.slane %v5661_v5, %v5695_v33 }
 0x1a4   : > { %v5663_v25 = vpop.permute.xlu0 %3492  ;;  %v3839_v33 = vsel %vm3670_vm10, %v3838_v31, %v3834_v30 }
 0x1a5   : > { %v5665_v10 = vpop.permute.xlu1 %3438  ;;  %v3774_v8 = vrot.slane %v5663_v25, %v5717_v2 }
 0x1a6   : > { %v3676_v57 = vrot.slane %v5665_v10, %v5703_v11 }
 0x1a7   : > { %v3775_v49 = vsel %vm3691_vm13, %v3774_v8, %v3770_v34 }
 0x1a8   : > { %v5668_v62 = vpop.permute.xlu0 %3588 }
 0x1a9   : > { %v3932_v40 = vrot.slane %v5668_v62, %v5717_v2  ;;  %v3928_v62 = vsel %vm3684_vm12, %v3927_v43, %v3923_v37 }
 0x1aa   : > { %v5671_v63 = vpop.permute.xlu1 %3534 }
 0x1ab   : > { %v3933_v38 = vsel %vm3691_vm13, %v3932_v40, %v3928_v62  ;;  %v3843_v58 = vrot.slane %v5671_v63, %v5703_v11  ;;  %v3671_v63 = vsel %vm3670_vm10, %v3669_v17, %v3664_v26 }
 0x1ac   : > { %v3678_v20 = vsel %vm3677_vm11, %v3676_v57, %v3671_v63 }
 0x1ad   : > { %v5679_v46 = vpop.permute.xlu0 %3495 }
 0x1ae   : > { %v5685_v1 = vpop.permute.xlu1 %3441  ;;  %v3779_v55 = vrot.slane %v5679_v46, %v5720_v36 }
 0x1af   : > { %v3683_v52 = vrot.slane %v5685_v1, %v5710_v3 }
 0x1b0   : > { %v3780_v39 = vsel %vm3698_vm14, %v3779_v55, %v3775_v49 }
 0x1b1   : > { %v3592_v56 = vpop.permute.xlu0 %3591  ;;  %v3685_v23 = vsel %vm3684_vm12, %v3683_v52, %v3678_v20 }
 0x1b2   : > { %v3937_v42 = vrot.slane %v3592_v56, %v5720_v36 }
 0x1b3   : > { %v5722_v14 = vpop.permute.xlu1 %3537 }
 0x1b4   : > { %v3938_v59 = vsel %vm3698_vm14, %v3937_v42, %v3933_v38  ;;  %v3848_v5 = vrot.slane %v5722_v14, %v5710_v3  ;;  %v3844_v3 = vsel %vm3677_vm11, %v3843_v58, %v3839_v33 }
 0x1b5   : > { %v3499_v29 = vpop.permute.xlu0 %3498 }
 0x1b6   : > { %v3784_v25 = vrot.slane %v3499_v29, %v5731_v4  ;;  %v3849_v21 = vsel %vm3684_vm12, %v3848_v5, %v3844_v3 }
 0x1b7   : > { %v3445_v60 = vpop.permute.xlu1 %3444 }
 0x1b8   : > { %v3785_v18 = vsel %vm3705_vm15, %v3784_v25, %v3780_v39  ;;  %v3690_v10 = vrot.slane %v3445_v60, %v5717_v2  ;;  %v4179_v25 = vld [vmem:[%s5882_s2] ss:$0 sm:$0xff] }
 0x1b9   : > { %v3595_v45 = vpop.permute.xlu0 %3594 }
 0x1ba   : > { %v3942_v22 = vrot.slane %v3595_v45, %v5731_v4 }
 0x1bb   : > { %v3541_v46 = vpop.permute.xlu1 %3540 }
 0x1bc   : > { %v3943_v61 = vsel %vm3705_vm15, %v3942_v22, %v3938_v59  ;;  %v3853_v12 = vrot.slane %v3541_v46, %v5717_v2  ;;  %v3692_v2 = vsel %vm3691_vm13, %v3690_v10, %v3685_v23 }
 0x1bd   : > { %v3946_v56 = vsel %vm3944_vm0, %v3943_v61, %v3785_v18 }
 0x1be   : > { %v3854_v29 = vsel %vm3691_vm13, %v3853_v12, %v3849_v21 }
 0x1bf   : > { %v3448_v51 = vpop.permute.xlu1 %3447 }
 0x1c0   : > { %v3697_v11 = vrot.slane %v3448_v51, %v5720_v36 }
 0x1c3   : > { %v3544_v13 = vpop.permute.xlu1 %3543 }
 0x1c4   : > { %v3858_v1 = vrot.slane %v3544_v13, %v5720_v36  ;;  %v3699_v36 = vsel %vm3698_vm14, %v3697_v11, %v3692_v2 }
 0x1c6   : > { %v3859_v41 = vsel %vm3698_vm14, %v3858_v1, %v3854_v29 }
 0x1c7   : > { %v3451_v0 = vpop.permute.xlu1 %3450 }
 0x1c8   : > { %v3704_v14 = vrot.slane %v3451_v0, %v5731_v4 }
 0x1ca   : > { %v3706_v8 = vsel %vm3705_vm15, %v3704_v14, %v3699_v36 }
 0x1cb   : > { %v3547_v43 = vpop.permute.xlu1 %3546 }
 0x1cc   : > { %v3863_v16 = vrot.slane %v3547_v43, %v5731_v4 }
 0x1ce   : > { %v3864_v40 = vsel %vm3705_vm15, %v3863_v16, %v3859_v41 }
 0x1cf   : > { %v3945_v60 = vsel %vm3944_vm0, %v3864_v40, %v3706_v8 }
 0x1d0   : > { %v3947_v27 = vcombine.low %v3945_v60, %v3946_v56 }
 0x1d2   : > { %v3954_v55 = vrot.slane %v3947_v27, %v4740_v28 }
 0x1d4   : > { %v3956_v42 = vadd.f32 %v3954_v55, %v266_v53 }
 0x1d6   : > { %3957 = vst [vmem:[#allocation2] sm:$0xf] %v3956_v42 }
 0x1dd   : > { %v4180_v9 = vld.sshfl [vmem:[#allocation2] sm:$0x33 pattern:$0x76325410] }
 0x1de   : > { %v4009_v37 = vcombine.high %v4180_v9, %v4180_v9 }
 0x1e0   : > { %4076 = vmatprep.mubr.f32.mxu0 %v4009_v37 }
 0x1e1   : > { %4077 = vmatmul.mubr.f32.vlgmr.msra.gmra.mrb[0].mxu0 %v4180_v9 }
 0x2b4   : > { %v4218_v4 = vpop.f32.mrb[0].mxu0 }
 0x2b5   : > { %v4219_v34 = vpop.f32.mrb[1].mxu0 }
 0x2b6   : > { %v4220_v62 = vadd.f32 %v4219_v34, %v4218_v4 }
 0x2b8   : > { %v4079_v28 = vadd.f32 %v4220_v62, %v4179_v25 }
 0x2ba   : > { %4082 = vst [vmem:[%s186_s5] sm:$0x3] %v4079_v28 }
 0x2bb   : > { %4330 = shalt.err (!%p4327_p5)
}
 0x2bc   : > { %s4331_s21 = scalar_lea.hbm %s5833_s9, 32  ;;  %s4335_s27 = scalar_lea.hbm %s5883_s3, 64 }
 0x2bd   : > { %p4332_p6 = scmp.ne.s32.totalorder %s5833_s9, %s4331_s21  ;;  %p4336_p10 = scmp.lt.u32.totalorder %s5833_s9, %s5883_s3 }
 0x2be   : > { %p4337_p11 = scmp.lt.u32.totalorder %s4335_s27, %s4331_s21  ;;  %p4339_p13 = scmp.lt.u32.totalorder %s4331_s21, %s5833_s9 }
 0x2bf   : > { %p4333_p7 = pnand %p4332_p6, %p4465_p4 }
 0x2c0   : > { %p4338_p12 = por %p4337_p11, %p4336_p10 }
 0x2c1   : > { %p4334_p9 = pneg %p4333_p7 }
 0x2c2   : > { %p4340_p0 = por %p4339_p13, %p4338_p12 }
 0x2c4   : > { %p4341_p1 = pnand %p4340_p0, %p4334_p9 }
 0x2c6   : > { %4344 = shalt.err (!%p4341_p1)
}
 0x2c7   : > { %4253 = dma.vmem_to_hbm [thread:$0]  (%p4465_p4), %s5835_s6, 32, %s5833_s9, %s4084_s10  }
 0x2c8 PF: > { %p4259_p2 = scmp.ge.s32.totalorder %s4395_s17, 2  ;;  %s4109_s30 = sand.u32 1, %s4375_s12  }
 0x2c9   : > { %s4110_s4 = scalar_lea.sflag [#allocation4], %s4109_s30 }
 0x2ca   : > { %p4256_p3 = pnand %p4259_p2, %p4472_p8 }
 0x2cc   : > { %4370 = dma.done.wait (!%p4256_p3), %s4110_s4, 32  }
 0x2cd   : > { %4372 = vsyncadd (!%p4256_p3), %s4110_s4, 4294967264  ;;  %s16_s17 = sadd.s32 1, %s4395_s17   ;;  %s5886_s12 = smov %s4379_s13 }
 0x2ce   : > { %p13_p5 = scmp.ge.s32.totalorder %s16_s17, 4   ;;  %s5887_s13 = smov %s4383_s14 }
 0x2cf   : > { %s5888_s14 = smov %s4478_s25  ;;  %s5889_s15 = smov %s4391_s16 }
 0x2d0   : > { %s5890_s16 = smov %s5892_s20  ;;  %15 = sbr.rel (!%p13_p5) target bundleno = 4 (0x4), region = 75 }
 0x2d7   :  { %4115 = vsyncpa [#allocation4], 1 }
 0x2d8   :  { %4117 = vsyncpa [#allocation4 + $0x1], 1 }

</bundles_post_ra>
